<compile_context>
chip_gen: v7x
topology: tpu7x:2x2x1
jax: 0.10.0
libtpu: 0.0.40
codegen_flags: <defaults>
</compile_context>

<pallas_src>
import numpy as np
import jax
import jax.numpy as jnp
from jax import lax
from jax.experimental import pallas as pl
from jax.experimental.pallas import tpu as pltpu

KH = KW = 3


def conv_groupnorm_pallas(x_nchw, w_sn, bias, gamma, beta, *, n_groups,
                          eps=1e-5, block_n=None):
    """Forward of ConvNoActUnit: GroupNorm(Conv2d_3x3_s1_p1(x) + bias).

    x_nchw: (N, Cin, H, W) f32.  w_sn: (Cout, Cin, 3, 3) spectrally normalized.
    Returns (N, Cout, H, W) f32.
    """
    N, Cin, H, W = x_nchw.shape
    Cout = w_sn.shape[0]
    assert Cout % n_groups == 0
    Cg = Cout // n_groups
    HW = H * W

    if block_n is None:
        block_n = 2 if N % 2 == 0 else 1
    assert N % block_n == 0
    Nb = block_n

    inv_count = 1.0 / float(HW * Cg)

    # ---- zero-copy layout prep (reshapes only; stays NCHW) ----
    x_flat = x_nchw.reshape(N, Cin, HW).astype(jnp.float32)
    # W2[o, (kh*KW + kw)*Cin + i] = w[o, i, kh, kw]
    w2 = jnp.transpose(w_sn, (0, 2, 3, 1)).reshape(Cout, KH * KW * Cin)
    w2 = w2.astype(jnp.float32)
    b2 = bias.reshape(Cout, 1).astype(jnp.float32)
    g2 = gamma.reshape(Cout, 1).astype(jnp.float32)
    bt2 = beta.reshape(Cout, 1).astype(jnp.float32)

    # ---- static boundary masks for the 9 taps (host-side numpy, tiny) ----
    yy, xx = np.meshgrid(np.arange(H), np.arange(W), indexing="ij")
    yy = yy.reshape(-1)
    xx = xx.reshape(-1)
    masks_np = np.zeros((KH * KW, 1, HW), np.float32)
    for kh in range(KH):
        for kw in range(KW):
            dh, dw = kh - 1, kw - 1
            valid = ((yy + dh >= 0) & (yy + dh < H) &
                     (xx + dw >= 0) & (xx + dw < W))
            masks_np[kh * KW + kw, 0, :] = valid.astype(np.float32)
    masks = jnp.asarray(masks_np)

    # one-hot group selectors (n_groups, Cout, 1) for the VPU group reduce
    gsel_np = np.zeros((n_groups, Cout, 1), np.float32)
    for g in range(n_groups):
        gsel_np[g, g * Cg:(g + 1) * Cg, 0] = 1.0
    gsel = jnp.asarray(gsel_np)

    def kernel(x_ref, w_ref, b_ref, m_ref, gsel_ref, gamma_ref, beta_ref,
               o_ref, xcol_ref):
        # x_ref:    (Nb, Cin, HW)       NCHW block, spatial on lanes
        # o_ref:    (Nb, Cout, HW)
        # xcol_ref: (9*Cin, HW)         im2col scratch in VMEM
        w2_v = w_ref[...]              # (Cout, 9*Cin)
        bias_v = b_ref[...]            # (Cout, 1)
        gam_v = gamma_ref[...]         # (Cout, 1)
        bet_v = beta_ref[...]          # (Cout, 1)

        for b in range(Nb):
            x_b = x_ref[b]             # (Cin, HW)

            # im2col: 9 lane-rolled, boundary-masked taps -> (9*Cin, HW)
            for kh in range(KH):
                for kw in range(KW):
                    dh, dw = kh - 1, kw - 1
                    t = kh * KW + kw
                    if dh == 0 and dw == 0:
                        col = x_b
                    else:
                        s = dh * W + dw            # flat shift of the tap
                        col = pltpu.roll(x_b, (-s) % HW, axis=1) * m_ref[t]
                    xcol_ref[t * Cin:(t + 1) * Cin, :] = col

            # single MXU matmul, K = 9*Cin, lane-dense output (Cout, HW)
            acc = jnp.dot(w2_v, xcol_ref[...],
                          preferred_element_type=jnp.float32) + bias_v

            # GroupNorm over (Cg channels, H*W) for this sample (VPU/XLU only).
            ch_sum = jnp.sum(acc, axis=1, keepdims=True)        # (Cout, 1)
            ch_sq = jnp.sum(acc * acc, axis=1, keepdims=True)   # (Cout, 1)
            gsum_c = jnp.zeros((Cout, 1), jnp.float32)
            gsq_c = jnp.zeros((Cout, 1), jnp.float32)
            for g in range(n_groups):
                sel = gsel_ref[g]                               # (Cout, 1) 0/1
                gs = jnp.sum(sel * ch_sum, keepdims=True)       # (1, 1)
                gq = jnp.sum(sel * ch_sq, keepdims=True)        # (1, 1)
                gsum_c = gsum_c + sel * gs
                gsq_c = gsq_c + sel * gq
            mean_c = gsum_c * inv_count
            var_c = jnp.maximum(gsq_c * inv_count - mean_c * mean_c, 0.0)
            istd_c = lax.rsqrt(var_c + eps)
            y = (acc - mean_c) * (istd_c * gam_v) + bet_v
            o_ref[b] = y.astype(o_ref.dtype)

    full = lambda shape: pl.BlockSpec(shape, lambda n: (0,) * len(shape))

    out_flat = pl.pallas_call(
        kernel,
        out_shape=jax.ShapeDtypeStruct((N, Cout, HW), jnp.float32),
        grid_spec=pltpu.PrefetchScalarGridSpec(
            num_scalar_prefetch=0,
            grid=(N // Nb,),
            in_specs=[
                pl.BlockSpec((Nb, Cin, HW), lambda n: (n, 0, 0)),
                full((Cout, KH * KW * Cin)),
                full((Cout, 1)),
                full((KH * KW, 1, HW)),
                full((n_groups, Cout, 1)),
                full((Cout, 1)),
                full((Cout, 1)),
            ],
            out_specs=pl.BlockSpec((Nb, Cout, HW), lambda n: (n, 0, 0)),
            scratch_shapes=[pltpu.VMEM((KH * KW * Cin, HW), jnp.float32)],
        ),
        compiler_params=pltpu.CompilerParams(
            dimension_semantics=("parallel",)),
    )(x_flat, w2, b2, masks, gsel, g2, bt2)

    # TODO(synk): for large H*W / Cout add spatial (row) tiling with a halo and a
    # two-pass GroupNorm so per-step residency also fits v7x's 64 MiB VMEM.
    return out_flat.reshape(N, Cout, H, W)      # metadata-only, already NCHW


def reference(x_nchw, w_sn, bias, gamma, beta, *, n_groups, eps=1e-5):
    y = lax.conv_general_dilated(
        x_nchw, w_sn, window_strides=(1, 1), padding=((1, 1), (1, 1)),
        dimension_numbers=("NCHW", "OIHW", "NCHW"))
    y = y + bias[None, :, None, None]
    N, C, H, W = y.shape
    yr = y.reshape(N, n_groups, (C // n_groups) * H * W)
    mean = yr.mean(axis=2, keepdims=True)
    var = yr.var(axis=2, keepdims=True)
    yn = ((yr - mean) / jnp.sqrt(var + eps)).reshape(N, C, H, W)
    return yn * gamma[None, :, None, None] + beta[None, :, None, None]


if __name__ == "__main__":
    # ConvNoActUnit(in_c=4, out_c=8, n_groupf=4) => GroupNorm(2 groups, 8 channels)
    N, Cin, Cout, H, W = 4, 4, 8, 16, 16
    n_groupf = 4
    n_groups = Cout // n_groupf

    key = jax.random.PRNGKey(0)
    kx, kw_, kb, kg, kbeta = jax.random.split(key, 5)

    x = jax.random.normal(kx, (N, Cin, H, W), jnp.float32)
    w = jax.random.normal(kw_, (Cout, Cin, 3, 3), jnp.float32) * 0.2
    bias = jax.random.normal(kb, (Cout,), jnp.float32) * 0.1
    gamma = 1.0 + 0.1 * jax.random.normal(kg, (Cout,), jnp.float32)
    beta = 0.1 * jax.random.normal(kbeta, (Cout,), jnp.float32)

    # spectral norm: divide the weight by its largest singular value
    # (parameter setup, equivalent to nn.utils.spectral_norm at convergence)
    w_np = np.asarray(w)
    sigma = np.linalg.svd(w_np.reshape(Cout, -1), compute_uv=False)[0]
    w_sn = jnp.asarray(w_np / sigma)

    out = conv_groupnorm_pallas(x, w_sn, bias, gamma, beta, n_groups=n_groups)
    out = jax.block_until_ready(out)

    ref = reference(x, w_sn, bias, gamma, beta, n_groups=n_groups)
    np.testing.assert_allclose(np.asarray(out), np.asarray(ref),
                               rtol=1e-3, atol=1e-3)
    print("KERNEL_OK")
</pallas_src>

<mosaic_0001>
module attributes {stable_mosaic.version = 11 : i64} {
  func.func @kernel(%arg0: i32, %arg1: memref<2x4x256xf32, #tpu.memory_space<vmem>>, %arg2: memref<8x36xf32, #tpu.memory_space<vmem>>, %arg3: memref<8x1xf32, #tpu.memory_space<vmem>>, %arg4: memref<9x1x256xf32, #tpu.memory_space<vmem>>, %arg5: memref<2x8x1xf32, #tpu.memory_space<vmem>>, %arg6: memref<8x1xf32, #tpu.memory_space<vmem>>, %arg7: memref<8x1xf32, #tpu.memory_space<vmem>>, %arg8: memref<2x8x256xf32, #tpu.memory_space<vmem>>, %arg9: memref<36x256xf32, #tpu.memory_space<vmem>>) attributes {dimension_semantics = [#tpu.dimension_semantics<parallel>], iteration_bounds = array<i64: 2>, scalar_prefetch = 0 : i64, scratch_operands = 1 : i64, tpu.core_type = #tpu.core_type<tc>, window_params = [{transform_indices = @transform_0, window_bounds = array<i64: 2, 4, 256>}, {pipeline_mode = #tpu.pipeline_mode<synchronous>, transform_indices = @transform_1, window_bounds = array<i64: 8, 36>}, {pipeline_mode = #tpu.pipeline_mode<synchronous>, transform_indices = @transform_2, window_bounds = array<i64: 8, 1>}, {pipeline_mode = #tpu.pipeline_mode<synchronous>, transform_indices = @transform_3, window_bounds = array<i64: 9, 1, 256>}, {pipeline_mode = #tpu.pipeline_mode<synchronous>, transform_indices = @transform_4, window_bounds = array<i64: 2, 8, 1>}, {pipeline_mode = #tpu.pipeline_mode<synchronous>, transform_indices = @transform_5, window_bounds = array<i64: 8, 1>}, {pipeline_mode = #tpu.pipeline_mode<synchronous>, transform_indices = @transform_6, window_bounds = array<i64: 8, 1>}, {transform_indices = @transform_7, window_bounds = array<i64: 2, 8, 256>}]} {
    %c0 = arith.constant 0 : index
    %c0_0 = arith.constant 0 : index
    %0 = vector.load %arg2[%c0, %c0_0] : memref<8x36xf32, #tpu.memory_space<vmem>>, vector<8x36xf32>
    %c0_1 = arith.constant 0 : index
    %c0_2 = arith.constant 0 : index
    %1 = vector.load %arg3[%c0_1, %c0_2] : memref<8x1xf32, #tpu.memory_space<vmem>>, vector<8x1xf32>
    %c0_3 = arith.constant 0 : index
    %c0_4 = arith.constant 0 : index
    %2 = vector.load %arg6[%c0_3, %c0_4] : memref<8x1xf32, #tpu.memory_space<vmem>>, vector<8x1xf32>
    %c0_5 = arith.constant 0 : index
    %c0_6 = arith.constant 0 : index
    %3 = vector.load %arg7[%c0_5, %c0_6] : memref<8x1xf32, #tpu.memory_space<vmem>>, vector<8x1xf32>
    %c0_7 = arith.constant 0 : index
    %c0_8 = arith.constant 0 : index
    %c0_9 = arith.constant 0 : index
    %4 = vector.load %arg1[%c0_7, %c0_8, %c0_9] : memref<2x4x256xf32, #tpu.memory_space<vmem>>, vector<1x4x256xf32>
    %5 = vector.shape_cast %4 : vector<1x4x256xf32> to vector<4x256xf32>
    %c17_i32 = arith.constant 17 : i32
    %6 = tpu.dynamic_rotate %5 by %c17_i32 dim 1 : vector<4x256xf32>, i32 -> vector<4x256xf32>
    %c0_10 = arith.constant 0 : index
    %c0_11 = arith.constant 0 : index
    %c0_12 = arith.constant 0 : index
    %7 = vector.load %arg4[%c0_10, %c0_11, %c0_12] : memref<9x1x256xf32, #tpu.memory_space<vmem>>, vector<1x1x256xf32>
    %8 = vector.shape_cast %7 : vector<1x1x256xf32> to vector<1x256xf32>
    %9 = vector.broadcast %8 : vector<1x256xf32> to vector<4x256xf32>
    %10 = arith.mulf %6, %9 : vector<4x256xf32>
    %c0_13 = arith.constant 0 : index
    %c0_14 = arith.constant 0 : index
    %11 = vector.load %arg9[%c0_13, %c0_14] : memref<36x256xf32, #tpu.memory_space<vmem>>, vector<4x256xf32>
    tpu.vector_store %arg9[%c0_13, %c0_14], %10 {strides = array<i32>} : memref<36x256xf32, #tpu.memory_space<vmem>>, vector<4x256xf32>,
    %c16_i32 = arith.constant 16 : i32
    %12 = tpu.dynamic_rotate %5 by %c16_i32 dim 1 : vector<4x256xf32>, i32 -> vector<4x256xf32>
    %c1 = arith.constant 1 : index
    %c0_15 = arith.constant 0 : index
    %c0_16 = arith.constant 0 : index
    %13 = vector.load %arg4[%c1, %c0_15, %c0_16] : memref<9x1x256xf32, #tpu.memory_space<vmem>>, vector<1x1x256xf32>
    %14 = vector.shape_cast %13 : vector<1x1x256xf32> to vector<1x256xf32>
    %15 = vector.broadcast %14 : vector<1x256xf32> to vector<4x256xf32>
    %16 = arith.mulf %12, %15 : vector<4x256xf32>
    %c4 = arith.constant 4 : index
    %c0_17 = arith.constant 0 : index
    %17 = vector.load %arg9[%c4, %c0_17] : memref<36x256xf32, #tpu.memory_space<vmem>>, vector<4x256xf32>
    tpu.vector_store %arg9[%c4, %c0_17], %16 {strides = array<i32>} : memref<36x256xf32, #tpu.memory_space<vmem>>, vector<4x256xf32>,
    %c15_i32 = arith.constant 15 : i32
    %18 = tpu.dynamic_rotate %5 by %c15_i32 dim 1 : vector<4x256xf32>, i32 -> vector<4x256xf32>
    %c2 = arith.constant 2 : index
    %c0_18 = arith.constant 0 : index
    %c0_19 = arith.constant 0 : index
    %19 = vector.load %arg4[%c2, %c0_18, %c0_19] : memref<9x1x256xf32, #tpu.memory_space<vmem>>, vector<1x1x256xf32>
    %20 = vector.shape_cast %19 : vector<1x1x256xf32> to vector<1x256xf32>
    %21 = vector.broadcast %20 : vector<1x256xf32> to vector<4x256xf32>
    %22 = arith.mulf %18, %21 : vector<4x256xf32>
    %c8 = arith.constant 8 : index
    %c0_20 = arith.constant 0 : index
    %23 = vector.load %arg9[%c8, %c0_20] : memref<36x256xf32, #tpu.memory_space<vmem>>, vector<4x256xf32>
    tpu.vector_store %arg9[%c8, %c0_20], %22 {strides = array<i32>} : memref<36x256xf32, #tpu.memory_space<vmem>>, vector<4x256xf32>,
    %c1_i32 = arith.constant 1 : i32
    %24 = tpu.dynamic_rotate %5 by %c1_i32 dim 1 : vector<4x256xf32>, i32 -> vector<4x256xf32>
    %c3 = arith.constant 3 : index
    %c0_21 = arith.constant 0 : index
    %c0_22 = arith.constant 0 : index
    %25 = vector.load %arg4[%c3, %c0_21, %c0_22] : memref<9x1x256xf32, #tpu.memory_space<vmem>>, vector<1x1x256xf32>
    %26 = vector.shape_cast %25 : vector<1x1x256xf32> to vector<1x256xf32>
    %27 = vector.broadcast %26 : vector<1x256xf32> to vector<4x256xf32>
    %28 = arith.mulf %24, %27 : vector<4x256xf32>
    %c12 = arith.constant 12 : index
    %c0_23 = arith.constant 0 : index
    %29 = vector.load %arg9[%c12, %c0_23] : memref<36x256xf32, #tpu.memory_space<vmem>>, vector<4x256xf32>
    tpu.vector_store %arg9[%c12, %c0_23], %28 {strides = array<i32>} : memref<36x256xf32, #tpu.memory_space<vmem>>, vector<4x256xf32>,
    %c16 = arith.constant 16 : index
    %c0_24 = arith.constant 0 : index
    %30 = vector.load %arg9[%c16, %c0_24] : memref<36x256xf32, #tpu.memory_space<vmem>>, vector<4x256xf32>
    tpu.vector_store %arg9[%c16, %c0_24], %5 {strides = array<i32>} : memref<36x256xf32, #tpu.memory_space<vmem>>, vector<4x256xf32>,
    %c255_i32 = arith.constant 255 : i32
    %31 = tpu.dynamic_rotate %5 by %c255_i32 dim 1 : vector<4x256xf32>, i32 -> vector<4x256xf32>
    %c5 = arith.constant 5 : index
    %c0_25 = arith.constant 0 : index
    %c0_26 = arith.constant 0 : index
    %32 = vector.load %arg4[%c5, %c0_25, %c0_26] : memref<9x1x256xf32, #tpu.memory_space<vmem>>, vector<1x1x256xf32>
    %33 = vector.shape_cast %32 : vector<1x1x256xf32> to vector<1x256xf32>
    %34 = vector.broadcast %33 : vector<1x256xf32> to vector<4x256xf32>
    %35 = arith.mulf %31, %34 : vector<4x256xf32>
    %c20 = arith.constant 20 : index
    %c0_27 = arith.constant 0 : index
    %36 = vector.load %arg9[%c20, %c0_27] : memref<36x256xf32, #tpu.memory_space<vmem>>, vector<4x256xf32>
    tpu.vector_store %arg9[%c20, %c0_27], %35 {strides = array<i32>} : memref<36x256xf32, #tpu.memory_space<vmem>>, vector<4x256xf32>,
    %c241_i32 = arith.constant 241 : i32
    %37 = tpu.dynamic_rotate %5 by %c241_i32 dim 1 : vector<4x256xf32>, i32 -> vector<4x256xf32>
    %c6 = arith.constant 6 : index
    %c0_28 = arith.constant 0 : index
    %c0_29 = arith.constant 0 : index
    %38 = vector.load %arg4[%c6, %c0_28, %c0_29] : memref<9x1x256xf32, #tpu.memory_space<vmem>>, vector<1x1x256xf32>
    %39 = vector.shape_cast %38 : vector<1x1x256xf32> to vector<1x256xf32>
    %40 = vector.broadcast %39 : vector<1x256xf32> to vector<4x256xf32>
    %41 = arith.mulf %37, %40 : vector<4x256xf32>
    %c24 = arith.constant 24 : index
    %c0_30 = arith.constant 0 : index
    %42 = vector.load %arg9[%c24, %c0_30] : memref<36x256xf32, #tpu.memory_space<vmem>>, vector<4x256xf32>
    tpu.vector_store %arg9[%c24, %c0_30], %41 {strides = array<i32>} : memref<36x256xf32, #tpu.memory_space<vmem>>, vector<4x256xf32>,
    %c240_i32 = arith.constant 240 : i32
    %43 = tpu.dynamic_rotate %5 by %c240_i32 dim 1 : vector<4x256xf32>, i32 -> vector<4x256xf32>
    %c7 = arith.constant 7 : index
    %c0_31 = arith.constant 0 : index
    %c0_32 = arith.constant 0 : index
    %44 = vector.load %arg4[%c7, %c0_31, %c0_32] : memref<9x1x256xf32, #tpu.memory_space<vmem>>, vector<1x1x256xf32>
    %45 = vector.shape_cast %44 : vector<1x1x256xf32> to vector<1x256xf32>
    %46 = vector.broadcast %45 : vector<1x256xf32> to vector<4x256xf32>
    %47 = arith.mulf %43, %46 : vector<4x256xf32>
    %c28 = arith.constant 28 : index
    %c0_33 = arith.constant 0 : index
    %48 = vector.load %arg9[%c28, %c0_33] : memref<36x256xf32, #tpu.memory_space<vmem>>, vector<4x256xf32>
    tpu.vector_store %arg9[%c28, %c0_33], %47 {strides = array<i32>} : memref<36x256xf32, #tpu.memory_space<vmem>>, vector<4x256xf32>,
    %c239_i32 = arith.constant 239 : i32
    %49 = tpu.dynamic_rotate %5 by %c239_i32 dim 1 : vector<4x256xf32>, i32 -> vector<4x256xf32>
    %c8_34 = arith.constant 8 : index
    %c0_35 = arith.constant 0 : index
    %c0_36 = arith.constant 0 : index
    %50 = vector.load %arg4[%c8_34, %c0_35, %c0_36] : memref<9x1x256xf32, #tpu.memory_space<vmem>>, vector<1x1x256xf32>
    %51 = vector.shape_cast %50 : vector<1x1x256xf32> to vector<1x256xf32>
    %52 = vector.broadcast %51 : vector<1x256xf32> to vector<4x256xf32>
    %53 = arith.mulf %49, %52 : vector<4x256xf32>
    %c32 = arith.constant 32 : index
    %c0_37 = arith.constant 0 : index
    %54 = vector.load %arg9[%c32, %c0_37] : memref<36x256xf32, #tpu.memory_space<vmem>>, vector<4x256xf32>
    tpu.vector_store %arg9[%c32, %c0_37], %53 {strides = array<i32>} : memref<36x256xf32, #tpu.memory_space<vmem>>, vector<4x256xf32>,
    %c0_38 = arith.constant 0 : index
    %c0_39 = arith.constant 0 : index
    %55 = vector.load %arg9[%c0_38, %c0_39] : memref<36x256xf32, #tpu.memory_space<vmem>>, vector<36x256xf32>
    %cst = arith.constant dense<0.000000e+00> : vector<8x256xf32>
    %56 = tpu.matmul %0, %55, %cst {dimension_numbers = #tpu.dot_dimension_numbers<[1], [0], [0], [1], [0, 0, 1, 1], [], []>} : vector<8x36xf32>, vector<36x256xf32>, vector<8x256xf32> -> vector<8x256xf32>
    %57 = vector.broadcast %1 : vector<8x1xf32> to vector<8x256xf32>
    %58 = arith.addf %56, %57 : vector<8x256xf32>
    %cst_40 = arith.constant dense<0.000000e+00> : vector<8xf32>
    %59 = vector.multi_reduction <add>, %58, %cst_40 [1] : vector<8x256xf32> to vector<8xf32>
    %60 = vector.shape_cast %59 : vector<8xf32> to vector<8x1xf32>
    %61 = arith.mulf %58, %58 : vector<8x256xf32>
    %cst_41 = arith.constant dense<0.000000e+00> : vector<8xf32>
    %62 = vector.multi_reduction <add>, %61, %cst_41 [1] : vector<8x256xf32> to vector<8xf32>
    %63 = vector.shape_cast %62 : vector<8xf32> to vector<8x1xf32>
    %cst_42 = arith.constant 0.000000e+00 : f32
    %64 = vector.broadcast %cst_42 : f32 to vector<8x1xf32>
    %cst_43 = arith.constant 0.000000e+00 : f32
    %65 = vector.broadcast %cst_43 : f32 to vector<8x1xf32>
    %c0_44 = arith.constant 0 : index
    %c0_45 = arith.constant 0 : index
    %c0_46 = arith.constant 0 : index
    %66 = vector.load %arg5[%c0_44, %c0_45, %c0_46] : memref<2x8x1xf32, #tpu.memory_space<vmem>>, vector<1x8x1xf32>
    %67 = vector.shape_cast %66 : vector<1x8x1xf32> to vector<8x1xf32>
    %68 = arith.mulf %67, %60 : vector<8x1xf32>
    %69 = vector.shape_cast %68 : vector<8x1xf32> to vector<1x8x1xf32>
    %cst_47 = arith.constant dense<0.000000e+00> : vector<1xf32>
    %70 = vector.multi_reduction <add>, %69, %cst_47 [1, 2] : vector<1x8x1xf32> to vector<1xf32>
    %71 = vector.shape_cast %70 : vector<1xf32> to vector<1x1x1xf32>
    %72 = vector.extract %71[0, 0, 0] : f32 from vector<1x1x1xf32>
    %73 = vector.broadcast %72 : f32 to vector<1x1xf32>
    %74 = arith.mulf %67, %63 : vector<8x1xf32>
    %75 = vector.shape_cast %74 : vector<8x1xf32> to vector<1x8x1xf32>
    %cst_48 = arith.constant dense<0.000000e+00> : vector<1xf32>
    %76 = vector.multi_reduction <add>, %75, %cst_48 [1, 2] : vector<1x8x1xf32> to vector<1xf32>
    %77 = vector.shape_cast %76 : vector<1xf32> to vector<1x1x1xf32>
    %78 = vector.extract %77[0, 0, 0] : f32 from vector<1x1x1xf32>
    %79 = vector.broadcast %78 : f32 to vector<1x1xf32>
    %80 = vector.broadcast %73 : vector<1x1xf32> to vector<8x1xf32>
    %81 = arith.mulf %67, %80 : vector<8x1xf32>
    %82 = arith.addf %64, %81 : vector<8x1xf32>
    %83 = vector.broadcast %79 : vector<1x1xf32> to vector<8x1xf32>
    %84 = arith.mulf %67, %83 : vector<8x1xf32>
    %85 = arith.addf %65, %84 : vector<8x1xf32>
    %c1_49 = arith.constant 1 : index
    %c0_50 = arith.constant 0 : index
    %c0_51 = arith.constant 0 : index
    %86 = vector.load %arg5[%c1_49, %c0_50, %c0_51] : memref<2x8x1xf32, #tpu.memory_space<vmem>>, vector<1x8x1xf32>
    %87 = vector.shape_cast %86 : vector<1x8x1xf32> to vector<8x1xf32>
    %88 = arith.mulf %87, %60 : vector<8x1xf32>
    %89 = vector.shape_cast %88 : vector<8x1xf32> to vector<1x8x1xf32>
    %cst_52 = arith.constant dense<0.000000e+00> : vector<1xf32>
    %90 = vector.multi_reduction <add>, %89, %cst_52 [1, 2] : vector<1x8x1xf32> to vector<1xf32>
    %91 = vector.shape_cast %90 : vector<1xf32> to vector<1x1x1xf32>
    %92 = vector.extract %91[0, 0, 0] : f32 from vector<1x1x1xf32>
    %93 = vector.broadcast %92 : f32 to vector<1x1xf32>
    %94 = arith.mulf %87, %63 : vector<8x1xf32>
    %95 = vector.shape_cast %94 : vector<8x1xf32> to vector<1x8x1xf32>
    %cst_53 = arith.constant dense<0.000000e+00> : vector<1xf32>
    %96 = vector.multi_reduction <add>, %95, %cst_53 [1, 2] : vector<1x8x1xf32> to vector<1xf32>
    %97 = vector.shape_cast %96 : vector<1xf32> to vector<1x1x1xf32>
    %98 = vector.extract %97[0, 0, 0] : f32 from vector<1x1x1xf32>
    %99 = vector.broadcast %98 : f32 to vector<1x1xf32>
    %100 = vector.broadcast %93 : vector<1x1xf32> to vector<8x1xf32>
    %101 = arith.mulf %87, %100 : vector<8x1xf32>
    %102 = arith.addf %82, %101 : vector<8x1xf32>
    %103 = vector.broadcast %99 : vector<1x1xf32> to vector<8x1xf32>
    %104 = arith.mulf %87, %103 : vector<8x1xf32>
    %105 = arith.addf %85, %104 : vector<8x1xf32>
    %cst_54 = arith.constant 9.765625E-4 : f32
    %106 = vector.broadcast %cst_54 : f32 to vector<8x1xf32>
    %107 = arith.mulf %102, %106 : vector<8x1xf32>
    %cst_55 = arith.constant 9.765625E-4 : f32
    %108 = vector.broadcast %cst_55 : f32 to vector<8x1xf32>
    %109 = arith.mulf %105, %108 : vector<8x1xf32>
    %110 = arith.mulf %107, %107 : vector<8x1xf32>
    %111 = arith.subf %109, %110 : vector<8x1xf32>
    %cst_56 = arith.constant 0.000000e+00 : f32
    %112 = vector.broadcast %cst_56 : f32 to vector<8x1xf32>
    %113 = arith.maximumf %111, %112 : vector<8x1xf32>
    %cst_57 = arith.constant 9.99999974E-6 : f32
    %114 = vector.broadcast %cst_57 : f32 to vector<8x1xf32>
    %115 = arith.addf %113, %114 : vector<8x1xf32>
    %116 = math.rsqrt %115 : vector<8x1xf32>
    %117 = vector.broadcast %107 : vector<8x1xf32> to vector<8x256xf32>
    %118 = arith.subf %58, %117 : vector<8x256xf32>
    %119 = arith.mulf %116, %2 : vector<8x1xf32>
    %120 = vector.broadcast %119 : vector<8x1xf32> to vector<8x256xf32>
    %121 = arith.mulf %118, %120 : vector<8x256xf32>
    %122 = vector.broadcast %3 : vector<8x1xf32> to vector<8x256xf32>
    %123 = arith.addf %121, %122 : vector<8x256xf32>
    %c0_58 = arith.constant 0 : index
    %c0_59 = arith.constant 0 : index
    %c0_60 = arith.constant 0 : index
    %124 = vector.load %arg8[%c0_58, %c0_59, %c0_60] : memref<2x8x256xf32, #tpu.memory_space<vmem>>, vector<1x8x256xf32>
    %125 = vector.shape_cast %124 : vector<1x8x256xf32> to vector<8x256xf32>
    %126 = vector.shape_cast %123 : vector<8x256xf32> to vector<1x8x256xf32>
    tpu.vector_store %arg8[%c0_58, %c0_59, %c0_60], %126 {strides = array<i32>} : memref<2x8x256xf32, #tpu.memory_space<vmem>>, vector<1x8x256xf32>,
    %c1_61 = arith.constant 1 : index
    %c0_62 = arith.constant 0 : index
    %c0_63 = arith.constant 0 : index
    %127 = vector.load %arg1[%c1_61, %c0_62, %c0_63] : memref<2x4x256xf32, #tpu.memory_space<vmem>>, vector<1x4x256xf32>
    %128 = vector.shape_cast %127 : vector<1x4x256xf32> to vector<4x256xf32>
    %c17_i32_64 = arith.constant 17 : i32
    %129 = tpu.dynamic_rotate %128 by %c17_i32_64 dim 1 : vector<4x256xf32>, i32 -> vector<4x256xf32>
    %c0_65 = arith.constant 0 : index
    %c0_66 = arith.constant 0 : index
    %c0_67 = arith.constant 0 : index
    %130 = vector.load %arg4[%c0_65, %c0_66, %c0_67] : memref<9x1x256xf32, #tpu.memory_space<vmem>>, vector<1x1x256xf32>
    %131 = vector.shape_cast %130 : vector<1x1x256xf32> to vector<1x256xf32>
    %132 = vector.broadcast %131 : vector<1x256xf32> to vector<4x256xf32>
    %133 = arith.mulf %129, %132 : vector<4x256xf32>
    %c0_68 = arith.constant 0 : index
    %c0_69 = arith.constant 0 : index
    %134 = vector.load %arg9[%c0_68, %c0_69] : memref<36x256xf32, #tpu.memory_space<vmem>>, vector<4x256xf32>
    tpu.vector_store %arg9[%c0_68, %c0_69], %133 {strides = array<i32>} : memref<36x256xf32, #tpu.memory_space<vmem>>, vector<4x256xf32>,
    %c16_i32_70 = arith.constant 16 : i32
    %135 = tpu.dynamic_rotate %128 by %c16_i32_70 dim 1 : vector<4x256xf32>, i32 -> vector<4x256xf32>
    %c1_71 = arith.constant 1 : index
    %c0_72 = arith.constant 0 : index
    %c0_73 = arith.constant 0 : index
    %136 = vector.load %arg4[%c1_71, %c0_72, %c0_73] : memref<9x1x256xf32, #tpu.memory_space<vmem>>, vector<1x1x256xf32>
    %137 = vector.shape_cast %136 : vector<1x1x256xf32> to vector<1x256xf32>
    %138 = vector.broadcast %137 : vector<1x256xf32> to vector<4x256xf32>
    %139 = arith.mulf %135, %138 : vector<4x256xf32>
    %c4_74 = arith.constant 4 : index
    %c0_75 = arith.constant 0 : index
    %140 = vector.load %arg9[%c4_74, %c0_75] : memref<36x256xf32, #tpu.memory_space<vmem>>, vector<4x256xf32>
    tpu.vector_store %arg9[%c4_74, %c0_75], %139 {strides = array<i32>} : memref<36x256xf32, #tpu.memory_space<vmem>>, vector<4x256xf32>,
    %c15_i32_76 = arith.constant 15 : i32
    %141 = tpu.dynamic_rotate %128 by %c15_i32_76 dim 1 : vector<4x256xf32>, i32 -> vector<4x256xf32>
    %c2_77 = arith.constant 2 : index
    %c0_78 = arith.constant 0 : index
    %c0_79 = arith.constant 0 : index
    %142 = vector.load %arg4[%c2_77, %c0_78, %c0_79] : memref<9x1x256xf32, #tpu.memory_space<vmem>>, vector<1x1x256xf32>
    %143 = vector.shape_cast %142 : vector<1x1x256xf32> to vector<1x256xf32>
    %144 = vector.broadcast %143 : vector<1x256xf32> to vector<4x256xf32>
    %145 = arith.mulf %141, %144 : vector<4x256xf32>
    %c8_80 = arith.constant 8 : index
    %c0_81 = arith.constant 0 : index
    %146 = vector.load %arg9[%c8_80, %c0_81] : memref<36x256xf32, #tpu.memory_space<vmem>>, vector<4x256xf32>
    tpu.vector_store %arg9[%c8_80, %c0_81], %145 {strides = array<i32>} : memref<36x256xf32, #tpu.memory_space<vmem>>, vector<4x256xf32>,
    %c1_i32_82 = arith.constant 1 : i32
    %147 = tpu.dynamic_rotate %128 by %c1_i32_82 dim 1 : vector<4x256xf32>, i32 -> vector<4x256xf32>
    %c3_83 = arith.constant 3 : index
    %c0_84 = arith.constant 0 : index
    %c0_85 = arith.constant 0 : index
    %148 = vector.load %arg4[%c3_83, %c0_84, %c0_85] : memref<9x1x256xf32, #tpu.memory_space<vmem>>, vector<1x1x256xf32>
    %149 = vector.shape_cast %148 : vector<1x1x256xf32> to vector<1x256xf32>
    %150 = vector.broadcast %149 : vector<1x256xf32> to vector<4x256xf32>
    %151 = arith.mulf %147, %150 : vector<4x256xf32>
    %c12_86 = arith.constant 12 : index
    %c0_87 = arith.constant 0 : index
    %152 = vector.load %arg9[%c12_86, %c0_87] : memref<36x256xf32, #tpu.memory_space<vmem>>, vector<4x256xf32>
    tpu.vector_store %arg9[%c12_86, %c0_87], %151 {strides = array<i32>} : memref<36x256xf32, #tpu.memory_space<vmem>>, vector<4x256xf32>,
    %c16_88 = arith.constant 16 : index
    %c0_89 = arith.constant 0 : index
    %153 = vector.load %arg9[%c16_88, %c0_89] : memref<36x256xf32, #tpu.memory_space<vmem>>, vector<4x256xf32>
    tpu.vector_store %arg9[%c16_88, %c0_89], %128 {strides = array<i32>} : memref<36x256xf32, #tpu.memory_space<vmem>>, vector<4x256xf32>,
    %c255_i32_90 = arith.constant 255 : i32
    %154 = tpu.dynamic_rotate %128 by %c255_i32_90 dim 1 : vector<4x256xf32>, i32 -> vector<4x256xf32>
    %c5_91 = arith.constant 5 : index
    %c0_92 = arith.constant 0 : index
    %c0_93 = arith.constant 0 : index
    %155 = vector.load %arg4[%c5_91, %c0_92, %c0_93] : memref<9x1x256xf32, #tpu.memory_space<vmem>>, vector<1x1x256xf32>
    %156 = vector.shape_cast %155 : vector<1x1x256xf32> to vector<1x256xf32>
    %157 = vector.broadcast %156 : vector<1x256xf32> to vector<4x256xf32>
    %158 = arith.mulf %154, %157 : vector<4x256xf32>
    %c20_94 = arith.constant 20 : index
    %c0_95 = arith.constant 0 : index
    %159 = vector.load %arg9[%c20_94, %c0_95] : memref<36x256xf32, #tpu.memory_space<vmem>>, vector<4x256xf32>
    tpu.vector_store %arg9[%c20_94, %c0_95], %158 {strides = array<i32>} : memref<36x256xf32, #tpu.memory_space<vmem>>, vector<4x256xf32>,
    %c241_i32_96 = arith.constant 241 : i32
    %160 = tpu.dynamic_rotate %128 by %c241_i32_96 dim 1 : vector<4x256xf32>, i32 -> vector<4x256xf32>
    %c6_97 = arith.constant 6 : index
    %c0_98 = arith.constant 0 : index
    %c0_99 = arith.constant 0 : index
    %161 = vector.load %arg4[%c6_97, %c0_98, %c0_99] : memref<9x1x256xf32, #tpu.memory_space<vmem>>, vector<1x1x256xf32>
    %162 = vector.shape_cast %161 : vector<1x1x256xf32> to vector<1x256xf32>
    %163 = vector.broadcast %162 : vector<1x256xf32> to vector<4x256xf32>
    %164 = arith.mulf %160, %163 : vector<4x256xf32>
    %c24_100 = arith.constant 24 : index
    %c0_101 = arith.constant 0 : index
    %165 = vector.load %arg9[%c24_100, %c0_101] : memref<36x256xf32, #tpu.memory_space<vmem>>, vector<4x256xf32>
    tpu.vector_store %arg9[%c24_100, %c0_101], %164 {strides = array<i32>} : memref<36x256xf32, #tpu.memory_space<vmem>>, vector<4x256xf32>,
    %c240_i32_102 = arith.constant 240 : i32
    %166 = tpu.dynamic_rotate %128 by %c240_i32_102 dim 1 : vector<4x256xf32>, i32 -> vector<4x256xf32>
    %c7_103 = arith.constant 7 : index
    %c0_104 = arith.constant 0 : index
    %c0_105 = arith.constant 0 : index
    %167 = vector.load %arg4[%c7_103, %c0_104, %c0_105] : memref<9x1x256xf32, #tpu.memory_space<vmem>>, vector<1x1x256xf32>
    %168 = vector.shape_cast %167 : vector<1x1x256xf32> to vector<1x256xf32>
    %169 = vector.broadcast %168 : vector<1x256xf32> to vector<4x256xf32>
    %170 = arith.mulf %166, %169 : vector<4x256xf32>
    %c28_106 = arith.constant 28 : index
    %c0_107 = arith.constant 0 : index
    %171 = vector.load %arg9[%c28_106, %c0_107] : memref<36x256xf32, #tpu.memory_space<vmem>>, vector<4x256xf32>
    tpu.vector_store %arg9[%c28_106, %c0_107], %170 {strides = array<i32>} : memref<36x256xf32, #tpu.memory_space<vmem>>, vector<4x256xf32>,
    %c239_i32_108 = arith.constant 239 : i32
    %172 = tpu.dynamic_rotate %128 by %c239_i32_108 dim 1 : vector<4x256xf32>, i32 -> vector<4x256xf32>
    %c8_109 = arith.constant 8 : index
    %c0_110 = arith.constant 0 : index
    %c0_111 = arith.constant 0 : index
    %173 = vector.load %arg4[%c8_109, %c0_110, %c0_111] : memref<9x1x256xf32, #tpu.memory_space<vmem>>, vector<1x1x256xf32>
    %174 = vector.shape_cast %173 : vector<1x1x256xf32> to vector<1x256xf32>
    %175 = vector.broadcast %174 : vector<1x256xf32> to vector<4x256xf32>
    %176 = arith.mulf %172, %175 : vector<4x256xf32>
    %c32_112 = arith.constant 32 : index
    %c0_113 = arith.constant 0 : index
    %177 = vector.load %arg9[%c32_112, %c0_113] : memref<36x256xf32, #tpu.memory_space<vmem>>, vector<4x256xf32>
    tpu.vector_store %arg9[%c32_112, %c0_113], %176 {strides = array<i32>} : memref<36x256xf32, #tpu.memory_space<vmem>>, vector<4x256xf32>,
    %c0_114 = arith.constant 0 : index
    %c0_115 = arith.constant 0 : index
    %178 = vector.load %arg9[%c0_114, %c0_115] : memref<36x256xf32, #tpu.memory_space<vmem>>, vector<36x256xf32>
    %cst_116 = arith.constant dense<0.000000e+00> : vector<8x256xf32>
    %179 = tpu.matmul %0, %178, %cst_116 {dimension_numbers = #tpu.dot_dimension_numbers<[1], [0], [0], [1], [0, 0, 1, 1], [], []>} : vector<8x36xf32>, vector<36x256xf32>, vector<8x256xf32> -> vector<8x256xf32>
    %180 = vector.broadcast %1 : vector<8x1xf32> to vector<8x256xf32>
    %181 = arith.addf %179, %180 : vector<8x256xf32>
    %cst_117 = arith.constant dense<0.000000e+00> : vector<8xf32>
    %182 = vector.multi_reduction <add>, %181, %cst_117 [1] : vector<8x256xf32> to vector<8xf32>
    %183 = vector.shape_cast %182 : vector<8xf32> to vector<8x1xf32>
    %184 = arith.mulf %181, %181 : vector<8x256xf32>
    %cst_118 = arith.constant dense<0.000000e+00> : vector<8xf32>
    %185 = vector.multi_reduction <add>, %184, %cst_118 [1] : vector<8x256xf32> to vector<8xf32>
    %186 = vector.shape_cast %185 : vector<8xf32> to vector<8x1xf32>
    %cst_119 = arith.constant 0.000000e+00 : f32
    %187 = vector.broadcast %cst_119 : f32 to vector<8x1xf32>
    %cst_120 = arith.constant 0.000000e+00 : f32
    %188 = vector.broadcast %cst_120 : f32 to vector<8x1xf32>
    %c0_121 = arith.constant 0 : index
    %c0_122 = arith.constant 0 : index
    %c0_123 = arith.constant 0 : index
    %189 = vector.load %arg5[%c0_121, %c0_122, %c0_123] : memref<2x8x1xf32, #tpu.memory_space<vmem>>, vector<1x8x1xf32>
    %190 = vector.shape_cast %189 : vector<1x8x1xf32> to vector<8x1xf32>
    %191 = arith.mulf %190, %183 : vector<8x1xf32>
    %192 = vector.shape_cast %191 : vector<8x1xf32> to vector<1x8x1xf32>
    %cst_124 = arith.constant dense<0.000000e+00> : vector<1xf32>
    %193 = vector.multi_reduction <add>, %192, %cst_124 [1, 2] : vector<1x8x1xf32> to vector<1xf32>
    %194 = vector.shape_cast %193 : vector<1xf32> to vector<1x1x1xf32>
    %195 = vector.extract %194[0, 0, 0] : f32 from vector<1x1x1xf32>
    %196 = vector.broadcast %195 : f32 to vector<1x1xf32>
    %197 = arith.mulf %190, %186 : vector<8x1xf32>
    %198 = vector.shape_cast %197 : vector<8x1xf32> to vector<1x8x1xf32>
    %cst_125 = arith.constant dense<0.000000e+00> : vector<1xf32>
    %199 = vector.multi_reduction <add>, %198, %cst_125 [1, 2] : vector<1x8x1xf32> to vector<1xf32>
    %200 = vector.shape_cast %199 : vector<1xf32> to vector<1x1x1xf32>
    %201 = vector.extract %200[0, 0, 0] : f32 from vector<1x1x1xf32>
    %202 = vector.broadcast %201 : f32 to vector<1x1xf32>
    %203 = vector.broadcast %196 : vector<1x1xf32> to vector<8x1xf32>
    %204 = arith.mulf %190, %203 : vector<8x1xf32>
    %205 = arith.addf %187, %204 : vector<8x1xf32>
    %206 = vector.broadcast %202 : vector<1x1xf32> to vector<8x1xf32>
    %207 = arith.mulf %190, %206 : vector<8x1xf32>
    %208 = arith.addf %188, %207 : vector<8x1xf32>
    %c1_126 = arith.constant 1 : index
    %c0_127 = arith.constant 0 : index
    %c0_128 = arith.constant 0 : index
    %209 = vector.load %arg5[%c1_126, %c0_127, %c0_128] : memref<2x8x1xf32, #tpu.memory_space<vmem>>, vector<1x8x1xf32>
    %210 = vector.shape_cast %209 : vector<1x8x1xf32> to vector<8x1xf32>
    %211 = arith.mulf %210, %183 : vector<8x1xf32>
    %212 = vector.shape_cast %211 : vector<8x1xf32> to vector<1x8x1xf32>
    %cst_129 = arith.constant dense<0.000000e+00> : vector<1xf32>
    %213 = vector.multi_reduction <add>, %212, %cst_129 [1, 2] : vector<1x8x1xf32> to vector<1xf32>
    %214 = vector.shape_cast %213 : vector<1xf32> to vector<1x1x1xf32>
    %215 = vector.extract %214[0, 0, 0] : f32 from vector<1x1x1xf32>
    %216 = vector.broadcast %215 : f32 to vector<1x1xf32>
    %217 = arith.mulf %210, %186 : vector<8x1xf32>
    %218 = vector.shape_cast %217 : vector<8x1xf32> to vector<1x8x1xf32>
    %cst_130 = arith.constant dense<0.000000e+00> : vector<1xf32>
    %219 = vector.multi_reduction <add>, %218, %cst_130 [1, 2] : vector<1x8x1xf32> to vector<1xf32>
    %220 = vector.shape_cast %219 : vector<1xf32> to vector<1x1x1xf32>
    %221 = vector.extract %220[0, 0, 0] : f32 from vector<1x1x1xf32>
    %222 = vector.broadcast %221 : f32 to vector<1x1xf32>
    %223 = vector.broadcast %216 : vector<1x1xf32> to vector<8x1xf32>
    %224 = arith.mulf %210, %223 : vector<8x1xf32>
    %225 = arith.addf %205, %224 : vector<8x1xf32>
    %226 = vector.broadcast %222 : vector<1x1xf32> to vector<8x1xf32>
    %227 = arith.mulf %210, %226 : vector<8x1xf32>
    %228 = arith.addf %208, %227 : vector<8x1xf32>
    %cst_131 = arith.constant 9.765625E-4 : f32
    %229 = vector.broadcast %cst_131 : f32 to vector<8x1xf32>
    %230 = arith.mulf %225, %229 : vector<8x1xf32>
    %cst_132 = arith.constant 9.765625E-4 : f32
    %231 = vector.broadcast %cst_132 : f32 to vector<8x1xf32>
    %232 = arith.mulf %228, %231 : vector<8x1xf32>
    %233 = arith.mulf %230, %230 : vector<8x1xf32>
    %234 = arith.subf %232, %233 : vector<8x1xf32>
    %cst_133 = arith.constant 0.000000e+00 : f32
    %235 = vector.broadcast %cst_133 : f32 to vector<8x1xf32>
    %236 = arith.maximumf %234, %235 : vector<8x1xf32>
    %cst_134 = arith.constant 9.99999974E-6 : f32
    %237 = vector.broadcast %cst_134 : f32 to vector<8x1xf32>
    %238 = arith.addf %236, %237 : vector<8x1xf32>
    %239 = math.rsqrt %238 : vector<8x1xf32>
    %240 = vector.broadcast %230 : vector<8x1xf32> to vector<8x256xf32>
    %241 = arith.subf %181, %240 : vector<8x256xf32>
    %242 = arith.mulf %239, %2 : vector<8x1xf32>
    %243 = vector.broadcast %242 : vector<8x1xf32> to vector<8x256xf32>
    %244 = arith.mulf %241, %243 : vector<8x256xf32>
    %245 = vector.broadcast %3 : vector<8x1xf32> to vector<8x256xf32>
    %246 = arith.addf %244, %245 : vector<8x256xf32>
    %c1_135 = arith.constant 1 : index
    %c0_136 = arith.constant 0 : index
    %c0_137 = arith.constant 0 : index
    %247 = vector.load %arg8[%c1_135, %c0_136, %c0_137] : memref<2x8x256xf32, #tpu.memory_space<vmem>>, vector<1x8x256xf32>
    %248 = vector.shape_cast %247 : vector<1x8x256xf32> to vector<8x256xf32>
    %249 = vector.shape_cast %246 : vector<8x256xf32> to vector<1x8x256xf32>
    tpu.vector_store %arg8[%c1_135, %c0_136, %c0_137], %249 {strides = array<i32>} : memref<2x8x256xf32, #tpu.memory_space<vmem>>, vector<1x8x256xf32>,
    return
  }
  func.func @transform_0(%arg0: i32) -> (i32, i32, i32) {
    %c0_i32 = arith.constant 0 : i32
    %c0_i32_0 = arith.constant 0 : i32
    %c0_i32_1 = arith.constant 0 : i32
    return %arg0, %c0_i32, %c0_i32_0 : i32, i32, i32
  }
  func.func @transform_1(%arg0: i32) -> (i32, i32) {
    %c0_i32 = arith.constant 0 : i32
    %c0_i32_0 = arith.constant 0 : i32
    %c0_i32_1 = arith.constant 0 : i32
    return %c0_i32, %c0_i32_0 : i32, i32
  }
  func.func @transform_2(%arg0: i32) -> (i32, i32) {
    %c0_i32 = arith.constant 0 : i32
    %c0_i32_0 = arith.constant 0 : i32
    %c0_i32_1 = arith.constant 0 : i32
    return %c0_i32, %c0_i32_0 : i32, i32
  }
  func.func @transform_3(%arg0: i32) -> (i32, i32, i32) {
    %c0_i32 = arith.constant 0 : i32
    %c0_i32_0 = arith.constant 0 : i32
    %c0_i32_1 = arith.constant 0 : i32
    %c0_i32_2 = arith.constant 0 : i32
    return %c0_i32, %c0_i32_0, %c0_i32_1 : i32, i32, i32
  }
  func.func @transform_4(%arg0: i32) -> (i32, i32, i32) {
    %c0_i32 = arith.constant 0 : i32
    %c0_i32_0 = arith.constant 0 : i32
    %c0_i32_1 = arith.constant 0 : i32
    %c0_i32_2 = arith.constant 0 : i32
    return %c0_i32, %c0_i32_0, %c0_i32_1 : i32, i32, i32
  }
  func.func @transform_5(%arg0: i32) -> (i32, i32) {
    %c0_i32 = arith.constant 0 : i32
    %c0_i32_0 = arith.constant 0 : i32
    %c0_i32_1 = arith.constant 0 : i32
    return %c0_i32, %c0_i32_0 : i32, i32
  }
  func.func @transform_6(%arg0: i32) -> (i32, i32) {
    %c0_i32 = arith.constant 0 : i32
    %c0_i32_0 = arith.constant 0 : i32
    %c0_i32_1 = arith.constant 0 : i32
    return %c0_i32, %c0_i32_0 : i32, i32
  }
  func.func @transform_7(%arg0: i32) -> (i32, i32, i32) {
    %c0_i32 = arith.constant 0 : i32
    %c0_i32_0 = arith.constant 0 : i32
    %c0_i32_1 = arith.constant 0 : i32
    return %arg0, %c0_i32, %c0_i32_0 : i32, i32, i32
  }
}

</mosaic_0001>

<bundles_post_ra>
// kernel: tpu_custom_call.1
= control target key start
LH: loop header
LB: loop body
LE: loop exit
PB: predicated region body
PF: predicated region fallthrough
CT: control target
= control target key end

     0   :  { %12 = vsyncpa [#allocation4], 0  ;;  %s1886_s0 = inlined_call_operand.vmem [shape: f32[4,4,256], index: 0, kind: input, shape index: {}]   ;;  %s1887_s1 = inlined_call_operand.hbm [shape: f32[8,36], index: 1, kind: input, shape index: {}]   ;;  %s1888_s2 = inlined_call_operand.vmem [shape: f32[8,1], index: 2, kind: input, shape index: {}]   ;;  %s1889_s3 = inlined_call_operand.vmem [shape: f32[9,1,256], index: 3, kind: input, shape index: {}]   ;;  %s1890_s4 = inlined_call_operand.vmem [shape: f32[2,8,1], index: 4, kind: input, shape index: {}]   ;;  %s1891_s5 = inlined_call_operand.vmem [shape: f32[8,1], index: 5, kind: input, shape index: {}]   ;;  %s1892_s6 = inlined_call_operand.vmem [shape: f32[8,1], index: 6, kind: input, shape index: {}]   ;;  %s1893_s7 = inlined_call_operand.hbm [shape: f32[4,8,256], index: 7, kind: output, shape index: {}]  }
   0x1   :  { %13 = vsyncpa [#allocation5], 0 }
   0x2   :  { %15 = vsyncpa [#allocation5 + $0x1], 0  ;;  %s1489_s24 = smov 0   ;;  %s1491_s25 = smov 0  }
   0x3   :  { %s1493_s26 = smov 0   ;;  %s1495_s27 = smov 0  }
   0x4 LB: > { %s1510_s28 = sadd.s32 4294967295, %s1434_s27   ;;  %s1195_s29 = sadd.s32 4294967294, %s1434_s27   ;;  %s1434_s27 = sphi %s1495_s27, %s1909_s27   ;;  %s1430_s26 = sphi %s1493_s26, %s1908_s26   ;;  %s1426_s25 = sphi %s1491_s25, %s1907_s25   ;;  %s1422_s24 = sphi %s1489_s24, %s1906_s24  }
   0x5   : > { %s1514_s30 = sadd.s32 1, %s1434_s27   ;;  %s180_s8 = sadd.s32 1, %s1430_s26 }
   0x6   : > { %s177_s9 = ssub.s32 %s1434_s27, %s1514_s30  ;;  %p190_p0 = scmp.ne.s32.totalorder %s1430_s26, %s1426_s25 }
   0x7   : > { %p178_p1 = scmp.eq.s32.totalorder %s177_s9, 0  ;;  %p191_p2 = scmp.eq.s32.totalorder %s1510_s28, 1 }
   0x8   : > { %p196_p3 = scmp.ne.s32.totalorder %s1426_s25, %s1422_s24  ;;  %p197_p4 = scmp.eq.s32.totalorder %s1195_s29, 1 }
   0x9   : > { %s1525_s10 = scalar_select %p178_p1, %s1430_s26, %s180_s8  }
   0xa   : > { %p1527_p5 = por %p191_p2, %p190_p0  ;;  %p1531_p6 = por %p197_p4, %p196_p3 }
   0xb   : > { %p1196_p7 = scmp.ge.s32.totalorder %s1434_s27, 1  ;;  %p204_p8 = scmp.lt.s32.totalorder %s1434_s27, 3 }
   0xc   : > { %s1897_s11 = scalar_select %p1527_p5, 1, 0 }
   0xd   : > { %s1898_s12 = scalar_select %p1531_p6, 1, 0 }
   0xe   : > { %p1894_p9 = scmp.eq.s32.totalorder %s1510_s28, 0  ;;  %p1538_p10 = pnand %p1196_p7, %p204_p8 }
   0xf   : > { %s1436_s14 = smov [#allocation3]   ;;  %s1340_s19 = scalar_lea.hbm %s1887_s1, 128 }
  0x10   : > { %s1899_s13 = scalar_select %p1538_p10, 1, 0 }
  0x11   : > { %s217_s15 = sshll.u32 %s1436_s14, 4  ;;  %p1277_p11 = pneg %p1538_p10  ;;  %s218_s15 = int_to_ptr.vmem [resolvable:$true] %s217_s15 }
  0x12   : > { %p1341_p13 = scmp.ne.s32.totalorder %s1887_s1, %s1340_s19  ;;  %p1347_p3 = scmp.lt.u32.totalorder %s1340_s19, %s1887_s1 }
  0x13   : > { %p1546_p12 = pnand %p1894_p9, %p1277_p11 }
  0x15   : > { %p1342_p0 = pneg %p1546_p12 }
  0x17   : > { %p1343_p1 = pnand %p1342_p0, %p1341_p13 }
  0x19   : > { %p1344_p2 = pneg %p1343_p1 }
  0x1b   : > { %p1349_p4 = pnand %p1347_p3, %p1344_p2 }
  0x1d   : > { %1352 = shalt.err (!%p1349_p4)
}
  0x1e   : > { %s1353_s29 = scalar_lea.vmem %s218_s15, 128  ;;  %p1361_p9 = scmp.lt.s32.totalorder %s218_s15, %s218_s15 }
  0x1f   : > { %p1354_p7 = scmp.ne.s32.totalorder %s218_s15, %s1353_s29  ;;  %p1362_p6 = scmp.lt.s32.totalorder %s1353_s29, %s1353_s29 }
  0x21   : > { %p1356_p8 = pnand %p1354_p7, %p1342_p0  ;;  %p1363_p5 = por %p1362_p6, %p1361_p9 }
  0x23   : > { %p1357_p11 = pneg %p1356_p8 }
  0x25   : > { %p1364_p10 = pnand %p1363_p5, %p1357_p11 }
  0x27   : > { %1367 = shalt.err (!%p1364_p10)
}
  0x28   : > { %1280 = dma.hbm_to_vmem [thread:$0]  (!%p1546_p12), %s1887_s1, 128, %s218_s15, [#allocation4]  }
  0x29   : > { %p1901_p13 = scmp.ne.s32.totalorder %s1899_s13, 0 }
  0x2a   : > { %p1902_p1 = scmp.eq.s32.totalorder (!%p1901_p13), %s1510_s28, 0 }
  0x2b   : > { %255 = sbr.rel (%p1901_p13) target bundleno = 993 (0x3e1), region = 48 }
  0x32   : > { %1413 = dma.done.wait (%p1902_p1), [#allocation4], 128   ;;  %p1903_p0 = pmov %p1902_p1 }
  0x33   : > { %s1202_s14 = sshll.u32 %s1510_s28, 1  ;;  %s1437_s15 = smov 1   ;;  %v1444_v4 = vmov 0.0   ;;  %v297_v5 = vld [vmem:[%s1888_s2] sm:$0xff]  ;;  %v1446_v6 = vmov 0   ;;  %v308_v7 = vlaneseq  ;;  %vm542_vm8 = vcmask 1043456  }
  0x34   : > { %1415 = vsyncadd (%p1903_p0), [#allocation4], 4294967168  ;;  %p289_p6 = scmp.lt.s32.totalorder %s1202_s14, 3  ;;  %s1438_s13 = smov 16   ;;  %613 = vmatprep.mubr.f32.mxu0 %v1444_v4  ;;  %1006 = vmatprep.mubr.f32.mxu1 %v1444_v4  ;;  %v1207_v12 = vld [vmem:[%s1889_s3 + $0x6] sm:$0x3] }
  0x35   : > { %s1439_s20 = smov 17   ;;  %s1440_s21 = smov 15   ;;  %1332 = vset.pattern.permute.xlu0 %v1446_v6  ;;  %1333 = vset.pattern.permute.xlu1 %v1446_v6  ;;  %v316_v8 = vshrl.u32 %v308_v7, 7  ;;  %v1605_v9 = vand.u32 127, %v308_v7  ;;  %v313_v17 = vld [vmem:[%s1889_s3] sm:$0x3] }
  0x36   : > { %s1911_s14 = smov (!%p289_p6, %s1202_s14), 3  ;;  %s1441_s22 = smov 127   ;;  %v1205_v18 = vld [vmem:[%s1889_s3 + $0x2] sm:$0x3]  ;;  %v1206_v25 = vld [vmem:[%s1889_s3 + $0x4] sm:$0x3] }
  0x37   : > { %s1236_s17 = sshll.u32 %s1911_s14, 3  ;;  %s1442_s23 = smov 112   ;;  %v1607_v10 = vsub.s32 0, %v316_v8  ;;  %v1609_v11 = vsub.s32 1, %v316_v8  ;;  %vm387_vm0 = vcmp.lt.s32.totalorder %v1605_v9, 1  ;;  %vm310_vm1 = vcmp.lt.s32.totalorder %v1605_v9, 17 }
  0x38   : > { %s293_s19 = scalar_lea.vmem %s1886_s0, %s1236_s17  ;;  %s1443_s29 = smov 113   ;;  %vm333_vm2 = vcmp.lt.s32.totalorder %v1605_v9, 16  ;;  %vm363_vm3 = vcmp.lt.s32.totalorder %v1605_v9, 15  ;;  %v1208_v44 = vld [vmem:[%s1889_s3 + $0xa] sm:$0x3]  ;;  %vm419_vm4 = vcmp.lt.s32.totalorder %v1605_v9, 127 }
  0x39   : > { %v300_v0 = vld [vmem:[%s293_s19] sm:$0xff]  ;;  %v1578_v2 = vld [vmem:[%s293_s19 + $0x8] sm:$0xff]  ;;  %s1445_s8 = smov 111   ;;  %v396_v15 = vrot.slane %v1207_v12, %v1607_v10  ;;  %v400_v16 = vrot.slane %v1207_v12, %v1609_v11  ;;  %v318_v23 = vrot.slane %v313_v17, %v1607_v10  ;;  %v322_v24 = vrot.slane %v313_v17, %v1609_v11  ;;  %p1904_p9 = scmp.ne.s32.totalorder %s1897_s11, 0 }
  0x3a   : > { %383 = vrot.lane.b32.xlu1 %v300_v0, %s1437_s15  ;;  %413 = vst [vmem:[#allocation2 + $0x20] sm:$0xf] %v300_v0  ;;  %329 = vrot.lane.b32.xlu0 %v300_v0, %s1438_s13  ;;  %v302_v1 = vcombine.high %v300_v0, %v300_v0  ;;  %v1582_v3 = vcombine.high %v1578_v2, %v1578_v2  ;;  %v1210_v55 = vld [vmem:[%s1889_s3 + $0xe] sm:$0x3]  ;;  %vm473_vm5 = vcmp.lt.s32.totalorder %v1605_v9, 112  ;;  %vm449_vm6 = vcmp.lt.s32.totalorder %v1605_v9, 113 }
  0x3b   : > { %v342_v28 = vrot.slane %v1205_v18, %v1607_v10  ;;  %v346_v29 = vrot.slane %v1205_v18, %v1609_v11  ;;  %v372_v34 = vrot.slane %v1206_v25, %v1607_v10  ;;  %v376_v35 = vrot.slane %v1206_v25, %v1609_v11  ;;  %v1217_v17 = vld [vmem:[%s1889_s3 + $0x2] sm:$0x3] }
  0x3c   : > { %414 = vst [vmem:[#allocation2 + $0x28] sm:$0xf] %v302_v1  ;;  %v428_v53 = vrot.slane %v1208_v44, %v1607_v10  ;;  %v432_v54 = vrot.slane %v1208_v44, %v1609_v11  ;;  %v482_v62 = vrot.slane %v1210_v55, %v1607_v10  ;;  %v486_v63 = vrot.slane %v1210_v55, %v1609_v11  ;;  %v730_v44 = vld [vmem:[%s1889_s3] sm:$0x3]  ;;  %v1218_v55 = vld [vmem:[%s1889_s3 + $0x4] sm:$0x3] }
  0x3d   : > { %vm503_vm7 = vcmp.lt.s32.totalorder %v1605_v9, 111  ;;  %vm538_vm9 = vcmask 293888   ;;  %vm630_vm10 = vcmask 7168  }
  0x3e   : > { %304 = vrot.lane.b32.xlu0 %v300_v0, %s1439_s20  ;;  %385 = vrot.lane.b32.xlu1 %v302_v1, %s1437_s15 }
  0x42   : > { %306 = vrot.lane.b32.xlu1 %v302_v1, %s1439_s20  ;;  %331 = vrot.lane.b32.xlu0 %v302_v1, %s1438_s13 }
  0x46   : > { %361 = vrot.lane.b32.xlu1 %v302_v1, %s1440_s21  ;;  %359 = vrot.lane.b32.xlu0 %v300_v0, %s1440_s21 }
  0x4a   : > { %417 = vrot.lane.b32.xlu1 %v302_v1, %s1441_s22  ;;  %415 = vrot.lane.b32.xlu0 %v300_v0, %s1441_s22 }
  0x4e   : > { %471 = vrot.lane.b32.xlu1 %v302_v1, %s1442_s23  ;;  %469 = vrot.lane.b32.xlu0 %v300_v0, %s1442_s23 }
  0x52   : > { %447 = vrot.lane.b32.xlu1 %v302_v1, %s1443_s29  ;;  %445 = vrot.lane.b32.xlu0 %v300_v0, %s1443_s29 }
  0x56   : > { %748 = vrot.lane.b32.xlu1 %v1582_v3, %s1438_s13  ;;  %746 = vrot.lane.b32.xlu0 %v1578_v2, %s1438_s13 }
  0x5a   : > { %798 = vrot.lane.b32.xlu1 %v1582_v3, %s1437_s15  ;;  %796 = vrot.lane.b32.xlu0 %v1578_v2, %s1437_s15 }
  0x5e   : > { %726 = vrot.lane.b32.xlu1 %v1582_v3, %s1439_s20  ;;  %724 = vrot.lane.b32.xlu0 %v1578_v2, %s1439_s20 }
  0x62   : > { %776 = vrot.lane.b32.xlu1 %v1582_v3, %s1440_s21  ;;  %774 = vrot.lane.b32.xlu0 %v1578_v2, %s1440_s21 }
  0x66   : > { %501 = vrot.lane.b32.xlu1 %v302_v1, %s1445_s8  ;;  %499 = vrot.lane.b32.xlu0 %v300_v0, %s1445_s8  ;;  %v1209_v0 = vld [vmem:[%s1889_s3 + $0xc] sm:$0x3] }
  0x6a   : > { %828 = vrot.lane.b32.xlu1 %v1582_v3, %s1441_s22  ;;  %826 = vrot.lane.b32.xlu0 %v1578_v2, %s1441_s22 }
  0x6e   : > { %878 = vrot.lane.b32.xlu1 %v1582_v3, %s1442_s23  ;;  %876 = vrot.lane.b32.xlu0 %v1578_v2, %s1442_s23 }
  0x72   : > { %856 = vrot.lane.b32.xlu1 %v1582_v3, %s1443_s29  ;;  %854 = vrot.lane.b32.xlu0 %v1578_v2, %s1443_s29  ;;  %s285_s29 = sand.u32 1, %s1426_s25  }
  0x76   : > { %906 = vrot.lane.b32.xlu1 %v1582_v3, %s1445_s8  ;;  %904 = vrot.lane.b32.xlu0 %v1578_v2, %s1445_s8 }
  0x7a   : > { %535 = vperm.xlu0 %1332, %v297_v5  }
  0xac   : > { %v384_v13 = vpop.permute.xlu1 %383  ;;  %v330_v14 = vpop.permute.xlu0 %329 }
  0xb0   : > { %v305_v19 = vpop.permute.xlu0 %304  ;;  %v386_v20 = vpop.permute.xlu1 %385 }
  0xb1   : > { %v388_v21 = vsel %vm387_vm0, %v384_v13, %v386_v20  ;;  %v389_v22 = vsel %vm387_vm0, %v386_v20, %v384_v13 }
  0xb2   : > { %v403_v26 = vmul.f32 %v396_v15, %v389_v22  ;;  %v404_v27 = vmul.f32 %v400_v16, %v388_v21  ;;  %v462_v15 = vrot.slane %v1209_v0, %v1609_v11 }
  0xb4   : > { %v407_v30 = vrot.slane %v403_v26, 4  ;;  %v408_v31 = vrot.slane %v404_v27, 4  ;;  %v307_v32 = vpop.permute.xlu1 %306  ;;  %v332_v33 = vpop.permute.xlu0 %331 }
  0xb5   : > { %v311_v36 = vsel %vm310_vm1, %v305_v19, %v307_v32  ;;  %v312_v37 = vsel %vm310_vm1, %v307_v32, %v305_v19  ;;  %v334_v38 = vsel %vm333_vm2, %v330_v14, %v332_v33  ;;  %v335_v39 = vsel %vm333_vm2, %v332_v33, %v330_v14  ;;  %v1219_v33 = vld [vmem:[%s1889_s3 + $0x6] sm:$0x3] }
  0xb6   : > { %411 = vst [vmem:[#allocation2 + $0x10] sm:$0xf0] %v407_v30  ;;  %412 = vst [vmem:[#allocation2 + $0x18] sm:$0xf0] %v408_v31  ;;  %v325_v40 = vmul.f32 %v318_v23, %v312_v37  ;;  %v326_v41 = vmul.f32 %v322_v24, %v311_v36  ;;  %v349_v42 = vmul.f32 %v342_v28, %v335_v39 }
  0xb7   : > { %v350_v43 = vmul.f32 %v346_v29, %v334_v38  ;;  %v458_v14 = vrot.slane %v1209_v0, %v1607_v10  ;;  %v757_v31 = vrot.slane %v1217_v17, %v1607_v10  ;;  %v761_v32 = vrot.slane %v1217_v17, %v1609_v11 }
  0xb8   : > { %327 = vst [vmem:[#allocation2] sm:$0xf] %v325_v40  ;;  %328 = vst [vmem:[#allocation2 + $0x8] sm:$0xf] %v326_v41  ;;  %v353_v45 = vrot.slane %v349_v42, 4  ;;  %v362_v47 = vpop.permute.xlu1 %361  ;;  %v360_v48 = vpop.permute.xlu0 %359  ;;  %v807_v42 = vrot.slane %v1219_v33, %v1607_v10 }
  0xb9   : > { %v354_v46 = vrot.slane %v350_v43, 4  ;;  %v364_v49 = vsel %vm363_vm3, %v360_v48, %v362_v47  ;;  %v365_v50 = vsel %vm363_vm3, %v362_v47, %v360_v48  ;;  %v811_v43 = vrot.slane %v1219_v33, %v1609_v11 }
  0xba   : > { %357 = vst [vmem:[#allocation2] sm:$0xf0] %v353_v45  ;;  %v379_v51 = vmul.f32 %v372_v34, %v365_v50  ;;  %v380_v52 = vmul.f32 %v376_v35, %v364_v49 }
  0xbb   : > { %358 = vst [vmem:[#allocation2 + $0x8] sm:$0xf0] %v354_v46 }
  0xbc   : > { %381 = vst [vmem:[#allocation2 + $0x10] sm:$0xf] %v379_v51  ;;  %382 = vst [vmem:[#allocation2 + $0x18] sm:$0xf] %v380_v52  ;;  %v418_v56 = vpop.permute.xlu1 %417  ;;  %v416_v57 = vpop.permute.xlu0 %415  ;;  %v739_v52 = vrot.slane %v730_v44, %v1609_v11 }
  0xbd   : > { %v420_v58 = vsel %vm419_vm4, %v416_v57, %v418_v56  ;;  %v421_v59 = vsel %vm419_vm4, %v418_v56, %v416_v57 }
  0xbe   : > { %v435_v60 = vmul.f32 %v428_v53, %v420_v58  ;;  %v436_v61 = vmul.f32 %v432_v54, %v421_v59 }
  0xc0   : > { %v439_v1 = vrot.slane %v435_v60, 4  ;;  %v440_v4 = vrot.slane %v436_v61, 4  ;;  %v472_v5 = vpop.permute.xlu1 %471  ;;  %v470_v6 = vpop.permute.xlu0 %469 }
  0xc1   : > { %v474_v7 = vsel %vm473_vm5, %v470_v6, %v472_v5  ;;  %v475_v8 = vsel %vm473_vm5, %v472_v5, %v470_v6  ;;  %v523_v19 = vld [vmem:[#allocation2] sm:$0xff]  ;;  %v789_v5 = vrot.slane %v1218_v55, %v1609_v11  ;;  %v1211_v6 = vld [vmem:[%s1889_s3 + $0x10] sm:$0x3] }
  0xc2   : > { %443 = vst [vmem:[#allocation2 + $0x20] sm:$0xf0] %v439_v1  ;;  %444 = vst [vmem:[#allocation2 + $0x28] sm:$0xf0] %v440_v4  ;;  %v489_v12 = vmul.f32 %v482_v62, %v474_v7  ;;  %v490_v13 = vmul.f32 %v486_v63, %v475_v8  ;;  %v524_v16 = vld [vmem:[#allocation2 + $0x8] sm:$0xff]  ;;  %v785_v4 = vrot.slane %v1218_v55, %v1607_v10 }
  0xc3   : > { %v526_v18 = vld [vmem:[#allocation2 + $0x18] sm:$0xff]  ;;  %v525_v20 = vld [vmem:[#allocation2 + $0x10] sm:$0xff]  ;;  %v516_v17 = vrot.slane %v1211_v6, %v1609_v11 }
  0xc4   : > { %v493_v21 = vrot.slane %v489_v12, 4  ;;  %v494_v22 = vrot.slane %v490_v13, 4  ;;  %v448_v23 = vpop.permute.xlu1 %447  ;;  %v446_v24 = vpop.permute.xlu0 %445  ;;  %v1239_v25 = vpack.c.bf16 %v526_v18, %v524_v16  ;;  %v1241_v26 = vpack.c.bf16 %v525_v20, %v523_v19  ;;  %v1220_v18 = vld [vmem:[%s1889_s3 + $0xa] sm:$0x3] }
  0xc5   : > { %v450_v27 = vsel %vm449_vm6, %v446_v24, %v448_v23  ;;  %v451_v28 = vsel %vm449_vm6, %v448_v23, %v446_v24  ;;  %v512_v16 = vrot.slane %v1211_v6, %v1607_v10 }
  0xc6   : > { %497 = vst [vmem:[#allocation2 + $0x30] sm:$0xf0] %v493_v21  ;;  %498 = vst [vmem:[#allocation2 + $0x38] sm:$0xf0] %v494_v22  ;;  %v465_v29 = vmul.f32 %v458_v14, %v450_v27  ;;  %v466_v30 = vmul.f32 %v462_v15, %v451_v28  ;;  %1240 = vmatprep.subr.bf16.mxu0 %v1239_v25  ;;  %v837_v25 = vrot.slane %v1220_v18, %v1607_v10  ;;  %v1222_v27 = vld [vmem:[%s1889_s3 + $0xe] sm:$0x3] }
  0xc7   : > { %1242 = vmatpush1.bf16.msra.mxu0 %v1241_v26  ;;  %v841_v26 = vrot.slane %v1220_v18, %v1609_v11 }
  0xc8   : > { %467 = vst [vmem:[#allocation2 + $0x30] sm:$0xf] %v465_v29  ;;  %468 = vst [vmem:[#allocation2 + $0x38] sm:$0xf] %v466_v30  ;;  %v749_v34 = vpop.permute.xlu1 %748  ;;  %v747_v35 = vpop.permute.xlu0 %746 }
  0xc9   : > { %v750_v36 = vsel %vm333_vm2, %v747_v35, %v749_v34  ;;  %v751_v37 = vsel %vm333_vm2, %v749_v34, %v747_v35  ;;  %v528_v38 = vld [vmem:[#allocation2 + $0x28] sm:$0xff]  ;;  %v527_v39 = vld [vmem:[#allocation2 + $0x20] sm:$0xff]  ;;  %v887_v34 = vrot.slane %v1222_v27, %v1607_v10  ;;  %v891_v35 = vrot.slane %v1222_v27, %v1609_v11 }
  0xca   : > { %v764_v40 = vmul.f32 %v757_v31, %v751_v37  ;;  %v765_v41 = vmul.f32 %v761_v32, %v750_v36  ;;  %825 = vst [vmem:[#allocation2 + $0x28] sm:$0xf] %v1582_v3  ;;  %824 = vst [vmem:[#allocation2 + $0x20] sm:$0xf] %v1578_v2  ;;  %v735_v2 = vrot.slane %v730_v44, %v1607_v10  ;;  %v1221_v37 = vld [vmem:[%s1889_s3 + $0xc] sm:$0x3] }
  0xcc   : > { %v768_v45 = vrot.slane %v764_v40, 4  ;;  %v769_v46 = vrot.slane %v765_v41, 4  ;;  %v799_v47 = vpop.permute.xlu1 %798  ;;  %v797_v48 = vpop.permute.xlu0 %796 }
  0xcd   : > { %v800_v49 = vsel %vm387_vm0, %v797_v48, %v799_v47  ;;  %v801_v50 = vsel %vm387_vm0, %v799_v47, %v797_v48 }
  0xce   : > { %772 = vst [vmem:[#allocation2] sm:$0xf0] %v768_v45  ;;  %773 = vst [vmem:[#allocation2 + $0x8] sm:$0xf0] %v769_v46  ;;  %v814_v51 = vmul.f32 %v807_v42, %v801_v50  ;;  %v815_v3 = vmul.f32 %v811_v43, %v800_v49  ;;  %v865_v49 = vrot.slane %v1221_v37, %v1607_v10 }
  0xcf   : > { %v530_v53 = vld [vmem:[#allocation2 + $0x38] sm:$0xff]  ;;  %v529_v54 = vld [vmem:[#allocation2 + $0x30] sm:$0xff] }
  0xd0   : > { %v818_v56 = vrot.slane %v814_v51, 4  ;;  %v819_v57 = vrot.slane %v815_v3, 4  ;;  %v727_v58 = vpop.permute.xlu1 %726  ;;  %v725_v59 = vpop.permute.xlu0 %724  ;;  %v1243_v60 = vpack.c.bf16 %v530_v53, %v528_v38  ;;  %v1245_v61 = vpack.c.bf16 %v529_v54, %v527_v39  ;;  %v1223_v54 = vld [vmem:[%s1889_s3 + $0x10] sm:$0x3] }
  0xd1   : > { %v728_v62 = vsel %vm310_vm1, %v725_v59, %v727_v58  ;;  %v729_v63 = vsel %vm310_vm1, %v727_v58, %v725_v59  ;;  %v869_v3 = vrot.slane %v1221_v37, %v1609_v11 }
  0xd2   : > { %822 = vst [vmem:[#allocation2 + $0x10] sm:$0xf0] %v818_v56  ;;  %823 = vst [vmem:[#allocation2 + $0x18] sm:$0xf0] %v819_v57  ;;  %v742_v0 = vmul.f32 %v735_v2, %v729_v63  ;;  %v743_v1 = vmul.f32 %v739_v52, %v728_v62  ;;  %1244 = vmatprep.subr.bf16.mxu0 %v1243_v60  ;;  %v296_v2 = vld [vmem:[#allocation3] sm:$0xff]  ;;  %v915_v63 = vrot.slane %v1223_v54, %v1607_v10 }
  0xd3   : > { %1246 = vmatpush1.bf16.msra.mxu0 %v1245_v61 }
  0xd4   : > { %744 = vst [vmem:[#allocation2] sm:$0xf] %v742_v0  ;;  %745 = vst [vmem:[#allocation2 + $0x8] sm:$0xf] %v743_v1  ;;  %v777_v7 = vpop.permute.xlu1 %776  ;;  %v775_v8 = vpop.permute.xlu0 %774  ;;  %v919_v0 = vrot.slane %v1223_v54, %v1609_v11 }
  0xd5   : > { %v778_v12 = vsel %vm363_vm3, %v775_v8, %v777_v7  ;;  %v779_v13 = vsel %vm363_vm3, %v777_v7, %v775_v8 }
  0xd6   : > { %v792_v14 = vmul.f32 %v785_v4, %v779_v13  ;;  %v793_v15 = vmul.f32 %v789_v5, %v778_v12 }
  0xd8   : > { %794 = vst [vmem:[#allocation2 + $0x10] sm:$0xf] %v792_v14  ;;  %795 = vst [vmem:[#allocation2 + $0x18] sm:$0xf] %v793_v15  ;;  %v502_v19 = vpop.permute.xlu1 %501  ;;  %v500_v20 = vpop.permute.xlu0 %499 }
  0xd9   : > { %v504_v21 = vsel %vm503_vm7, %v500_v20, %v502_v19  ;;  %v505_v22 = vsel %vm503_vm7, %v502_v19, %v500_v20 }
  0xda   : > { %v519_v23 = vmul.f32 %v512_v16, %v504_v21  ;;  %v520_v24 = vmul.f32 %v516_v17, %v505_v22 }
  0xdb   : > { %v927_v36 = vld [vmem:[#allocation2 + $0x8] sm:$0xff]  ;;  %v926_v39 = vld [vmem:[#allocation2] sm:$0xff] }
  0xdc   : > { %521 = vst [vmem:[#allocation2 + $0x40] sm:$0xf] %v519_v23  ;;  %522 = vst [vmem:[#allocation2 + $0x48] sm:$0xf] %v520_v24  ;;  %v829_v28 = vpop.permute.xlu1 %828  ;;  %v827_v29 = vpop.permute.xlu0 %826 }
  0xdd   : > { %v830_v30 = vsel %vm419_vm4, %v827_v29, %v829_v28  ;;  %v831_v31 = vsel %vm419_vm4, %v829_v28, %v827_v29 }
  0xde   : > { %v844_v32 = vmul.f32 %v837_v25, %v830_v30  ;;  %v845_v33 = vmul.f32 %v841_v26, %v831_v31 }
  0xdf   : > { %v929_v38 = vld [vmem:[#allocation2 + $0x18] sm:$0xff]  ;;  %v928_v40 = vld [vmem:[#allocation2 + $0x10] sm:$0xff] }
  0xe0   : > { %v848_v41 = vrot.slane %v844_v32, 4  ;;  %v849_v42 = vrot.slane %v845_v33, 4  ;;  %v879_v43 = vpop.permute.xlu1 %878  ;;  %v877_v44 = vpop.permute.xlu0 %876  ;;  %v1247_v45 = vpack.c.bf16 %v929_v38, %v927_v36  ;;  %v1249_v46 = vpack.c.bf16 %v928_v40, %v926_v39 }
  0xe1   : > { %v880_v47 = vsel %vm473_vm5, %v877_v44, %v879_v43  ;;  %v881_v48 = vsel %vm473_vm5, %v879_v43, %v877_v44 }
  0xe2   : > { %852 = vst [vmem:[#allocation2 + $0x20] sm:$0xf0] %v848_v41  ;;  %853 = vst [vmem:[#allocation2 + $0x28] sm:$0xf0] %v849_v42  ;;  %v894_v50 = vmul.f32 %v887_v34, %v880_v47  ;;  %v895_v51 = vmul.f32 %v891_v35, %v881_v48  ;;  %1248 = vmatprep.subr.bf16.mxu1 %v1247_v45  ;;  %v1794_v34 = vld [vmem:[%s1890_s4] sm:$0xff]  ;;  %v1799_v35 = vld [vmem:[%s1890_s4 + $0x8] sm:$0xff] }
  0xe3   : > { %1250 = vmatpush1.bf16.msra.mxu1 %v1249_v46  ;;  %v532_v52 = vld [vmem:[#allocation2 + $0x48] sm:$0xf]  ;;  %v531_v53 = vld [vmem:[#allocation2 + $0x40] sm:$0xf] }
  0xe4   : > { %v898_v55 = vrot.slane %v894_v50, 4  ;;  %v899_v56 = vrot.slane %v895_v51, 4  ;;  %v857_v57 = vpop.permute.xlu1 %856  ;;  %v855_v58 = vpop.permute.xlu0 %854  ;;  %1212 = vmatprep.subr.msk.mxu0 %vm542_vm8, %v532_v52 }
  0xe5   : > { %v858_v59 = vsel %vm449_vm6, %v855_v58, %v857_v57  ;;  %v859_v60 = vsel %vm449_vm6, %v857_v57, %v855_v58  ;;  %1213 = vmatpush1.msk.msra.mxu0 %vm542_vm8, %v531_v53 }
  0xe6   : > { %902 = vst [vmem:[#allocation2 + $0x30] sm:$0xf0] %v898_v55  ;;  %903 = vst [vmem:[#allocation2 + $0x38] sm:$0xf0] %v899_v56  ;;  %v872_v61 = vmul.f32 %v865_v49, %v858_v59  ;;  %v873_v62 = vmul.f32 %v869_v3, %v859_v60  ;;  %1214 = vmatmul.mubr.msk.f32.vlgmr.msra.gmra.mrb[0].mxu0 %vm538_vm9, %v296_v2 }
  0xe8   : > { %874 = vst [vmem:[#allocation2 + $0x30] sm:$0xf] %v872_v61  ;;  %875 = vst [vmem:[#allocation2 + $0x38] sm:$0xf] %v873_v62  ;;  %v907_v1 = vpop.permute.xlu1 %906  ;;  %v905_v4 = vpop.permute.xlu0 %904 }
  0xe9   : > { %v908_v5 = vsel %vm503_vm7, %v905_v4, %v907_v1  ;;  %v909_v6 = vsel %vm503_vm7, %v907_v1, %v905_v4  ;;  %v931_v12 = vld [vmem:[#allocation2 + $0x28] sm:$0xff]  ;;  %v930_v14 = vld [vmem:[#allocation2 + $0x20] sm:$0xff] }
  0xea   : > { %v922_v7 = vmul.f32 %v915_v63, %v908_v5  ;;  %v923_v8 = vmul.f32 %v919_v0, %v909_v6 }
  0xec   : > { %924 = vst [vmem:[#allocation2 + $0x40] sm:$0xf] %v922_v7  ;;  %925 = vst [vmem:[#allocation2 + $0x48] sm:$0xf] %v923_v8 }
  0xef   : > { %v933_v13 = vld [vmem:[#allocation2 + $0x38] sm:$0xff]  ;;  %v932_v10 = vld [vmem:[#allocation2 + $0x30] sm:$0xff] }
  0xf0   : > { %v1251_v15 = vpack.c.bf16 %v933_v13, %v931_v12  ;;  %v1253_v11 = vpack.c.bf16 %v932_v10, %v930_v14 }
  0xf2   : > { %1252 = vmatprep.subr.bf16.mxu1 %v1251_v15 }
  0xf3   : > { %1254 = vmatpush1.bf16.msra.mxu1 %v1253_v11  ;;  %v935_v16 = vld [vmem:[#allocation2 + $0x48] sm:$0xf]  ;;  %v934_v17 = vld [vmem:[#allocation2 + $0x40] sm:$0xf] }
  0xf4   : > { %1224 = vmatprep.subr.msk.mxu1 %vm542_vm8, %v935_v16 }
  0xf7   : > { %1225 = vmatpush1.msk.msra.mxu1 %vm542_vm8, %v934_v17 }
  0xf8   : > { %1226 = vmatmul.mubr.msk.f32.vlgmr.msra.gmra.mrb[0].mxu1 %vm538_vm9, %v296_v2 }
  0xf9   : > { %v536_v9 = vpop.permute.xlu0 %535 }
 0x1b9   : > { %v615_v18 = vpop.f32.mrb[0].mxu0 }
 0x1ba   : > { %v1771_v19 = vadd.f32 %v615_v18, %v536_v9  ;;  %v617_v20 = vpop.f32.mrb[1].mxu0 }
 0x1bb   : > { %v1773_v21 = vadd.f32 %v617_v20, %v536_v9 }
 0x1bc   : > { %v623_v22 = vmul.f32 %v1771_v19, %v1771_v19 }
 0x1bd   : > { %v620_v23 = vadd.f32 %v1773_v21, %v1771_v19  ;;  %v624_v24 = vmul.f32 %v1773_v21, %v1773_v21 }
 0x1bf   : > { %621 = vadd.xlane.f32.xlu1 %v620_v23  ;;  %v625_v25 = vadd.f32 %v624_v24, %v623_v22 }
 0x1c1   : > { %626 = vadd.xlane.f32.xlu0 %v625_v25 }
 0x1cb   : > { %v1008_v26 = vpop.f32.mrb[0].mxu1 }
 0x1cc   : > { %v1781_v27 = vadd.f32 %v1008_v26, %v536_v9  ;;  %v1010_v28 = vpop.f32.mrb[1].mxu1 }
 0x1cd   : > { %v1783_v29 = vadd.f32 %v1010_v28, %v536_v9 }
 0x1ce   : > { %v1016_v30 = vmul.f32 %v1781_v27, %v1781_v27 }
 0x1cf   : > { %v1013_v31 = vadd.f32 %v1783_v29, %v1781_v27  ;;  %v1017_v32 = vmul.f32 %v1783_v29, %v1783_v29 }
 0x1d1   : > { %1014 = vadd.xlane.f32.xlu1 %v1013_v31  ;;  %v1018_v33 = vadd.f32 %v1017_v32, %v1016_v30 }
 0x1d3   : > { %1019 = vadd.xlane.f32.xlu0 %v1018_v33 }
 0x24c   : > { %v622_v36 = vpop.xlane.xlu1 %621 }
 0x24d   : > { %v629_v37 = vmul.f32 %v1794_v34, %v622_v36  ;;  %v660_v38 = vmul.f32 %v1799_v35, %v622_v36 }
 0x24e   : > { %v627_v39 = vpop.xlane.xlu0 %626 }
 0x24f   : > { %v641_v40 = vmul.f32 %v1794_v34, %v627_v39  ;;  %v671_v41 = vmul.f32 %v1799_v35, %v627_v39  ;;  %v631_v42 = vsel %vm630_vm10, %v629_v37, 0.0  ;;  %v661_v44 = vsel %vm630_vm10, %v660_v38, 0.0 }
 0x250   : > { %632 = vadd.xlane.f32.xlu1 %v631_v42 }
 0x251   : > { %v642_v43 = vsel %vm630_vm10, %v641_v40, 0.0  ;;  %v672_v45 = vsel %vm630_vm10, %v671_v41, 0.0 }
 0x252   : > { %643 = vadd.xlane.f32.xlu0 %v642_v43 }
 0x254   : > { %662 = vadd.xlane.f32.xlu1 %v661_v44 }
 0x256   : > { %673 = vadd.xlane.f32.xlu0 %v672_v45 }
 0x25e   : > { %v1015_v46 = vpop.xlane.xlu1 %1014 }
 0x25f   : > { %v1022_v47 = vmul.f32 %v1015_v46, %v1794_v34  ;;  %v1051_v49 = vmul.f32 %v1799_v35, %v1015_v46 }
 0x260   : > { %v1020_v48 = vpop.xlane.xlu0 %1019 }
 0x261   : > { %v1033_v50 = vmul.f32 %v1020_v48, %v1794_v34  ;;  %v1023_v51 = vsel %vm630_vm10, %v1022_v47, 0.0  ;;  %v1062_v3 = vmul.f32 %v1799_v35, %v1020_v48  ;;  %v1052_v52 = vsel %vm630_vm10, %v1051_v49, 0.0 }
 0x262   : > { %1024 = vadd.xlane.f32.xlu1 %v1023_v51 }
 0x263   : > { %v1034_v2 = vsel %vm630_vm10, %v1033_v50, 0.0  ;;  %v1063_v53 = vsel %vm630_vm10, %v1062_v3, 0.0 }
 0x264   : > { %1035 = vadd.xlane.f32.xlu0 %v1034_v2 }
 0x266   : > { %1053 = vadd.xlane.f32.xlu1 %v1052_v52 }
 0x268   : > { %1064 = vadd.xlane.f32.xlu0 %v1063_v53 }
 0x2dd   : > { %v633_v54 = vpop.xlane.xlu1 %632 }
 0x2de   : > { %v634_v55 = vrot.slane %v633_v54, 4 }
 0x2df   : > { %v644_v56 = vpop.xlane.xlu0 %643 }
 0x2e0   : > { %v635_v57 = vadd.f32 %v634_v55, %v633_v54  ;;  %v645_v58 = vrot.slane %v644_v56, 4 }
 0x2e1   : > { %v663_v59 = vpop.xlane.xlu1 %662 }
 0x2e2   : > { %v636_v60 = vrot.slane %v635_v57, 2  ;;  %v646_v61 = vadd.f32 %v645_v58, %v644_v56  ;;  %v664_v62 = vrot.slane %v663_v59, 4 }
 0x2e3   : > { %v674_v63 = vpop.xlane.xlu0 %673 }
 0x2e4   : > { %v647_v0 = vrot.slane %v646_v61, 2  ;;  %v665_v1 = vadd.f32 %v664_v62, %v663_v59  ;;  %v675_v4 = vrot.slane %v674_v63, 4  ;;  %v637_v5 = vadd.f32 %v636_v60, %v635_v57 }
 0x2e6   : > { %v666_v6 = vrot.slane %v665_v1, 2  ;;  %v676_v7 = vadd.f32 %v675_v4, %v674_v63  ;;  %v638_v8 = vrot.slane %v637_v5, 1  ;;  %v648_v12 = vadd.f32 %v647_v0, %v646_v61 }
 0x2e8   : > { %v677_v13 = vrot.slane %v676_v7, 2  ;;  %v639_v14 = vadd.f32 %v638_v8, %v637_v5  ;;  %v649_v10 = vrot.slane %v648_v12, 1  ;;  %v667_v15 = vadd.f32 %v666_v6, %v665_v1 }
 0x2ea   : > { %1255 = vpush %v639_v14  ;;  %v650_v11 = vadd.f32 %v649_v10, %v648_v12  ;;  %v668_v16 = vrot.slane %v667_v15, 1  ;;  %v678_v17 = vadd.f32 %v677_v13, %v676_v7 }
 0x2ec   : > { %1257 = vpush %v650_v11  ;;  %v669_v9 = vadd.f32 %v668_v16, %v667_v15  ;;  %v679_v18 = vrot.slane %v678_v17, 1 }
 0x2ee   : > { %1259 = vpush %v669_v9  ;;  %v680_v20 = vadd.f32 %v679_v18, %v678_v17  ;;  %v298_v9 = vld [vmem:[%s1891_s5] sm:$0xff] }
 0x2ef   : > { %v1025_v22 = vpop.xlane.xlu1 %1024 }
 0x2f0   : > { %v1026_v23 = vrot.slane %v1025_v22, 4  ;;  %1261 = vpush %v680_v20 }
 0x2f1   : > { %v1036_v24 = vpop.xlane.xlu0 %1035 }
 0x2f2   : > { %v1027_v25 = vadd.f32 %v1026_v23, %v1025_v22  ;;  %v1037_v26 = vrot.slane %v1036_v24, 4 }
 0x2f3   : > { %v1054_v28 = vpop.xlane.xlu1 %1053 }
 0x2f4   : > { %v1028_v30 = vrot.slane %v1027_v25, 2  ;;  %v1038_v31 = vadd.f32 %v1037_v26, %v1036_v24  ;;  %v1055_v32 = vrot.slane %v1054_v28, 4  ;;  %v299_v24 = vld [vmem:[%s1892_s6] sm:$0xff] }
 0x2f5   : > { %v1065_v33 = vpop.xlane.xlu0 %1064 }
 0x2f6   : > { %v1039_v36 = vrot.slane %v1038_v31, 2  ;;  %v1056_v37 = vadd.f32 %v1055_v32, %v1054_v28  ;;  %v1066_v38 = vrot.slane %v1065_v33, 4  ;;  %v1029_v39 = vadd.f32 %v1028_v30, %v1027_v25 }
 0x2f8   : > { %v1057_v40 = vrot.slane %v1056_v37, 2  ;;  %v1067_v41 = vadd.f32 %v1066_v38, %v1065_v33  ;;  %v1030_v42 = vrot.slane %v1029_v39, 1  ;;  %v1040_v43 = vadd.f32 %v1039_v36, %v1038_v31 }
 0x2fa   : > { %v1068_v44 = vrot.slane %v1067_v41, 2  ;;  %v1031_v45 = vadd.f32 %v1030_v42, %v1029_v39  ;;  %v1041_v46 = vrot.slane %v1040_v43, 1  ;;  %v1058_v47 = vadd.f32 %v1057_v40, %v1056_v37 }
 0x2fc   : > { %1263 = vpush %v1031_v45  ;;  %v1042_v48 = vadd.f32 %v1041_v46, %v1040_v43  ;;  %v1059_v49 = vrot.slane %v1058_v47, 1  ;;  %v1069_v50 = vadd.f32 %v1068_v44, %v1067_v41 }
 0x2fe   : > { %1265 = vpush %v1042_v48  ;;  %v1060_v51 = vadd.f32 %v1059_v49, %v1058_v47  ;;  %v1070_v3 = vrot.slane %v1069_v50, 1 }
 0x300   : > { %1267 = vpush %v1060_v51  ;;  %v1071_v2 = vadd.f32 %v1070_v3, %v1069_v50 }
 0x302   : > { %1269 = vpush %v1071_v2 }
 0x31b   : > { %s1256_s8 = spop %1255 }
 0x31c   : > { %v652_v52 = vstv %s1256_s8  ;;  %s1201_s8 = sshll.u32 %s285_s29, 5 }
 0x31d   : > { %s1258_s9 = spop %1257  ;;  %v653_v54 = vmul.f32 %v652_v52, %v1794_v34 }
 0x31e   : > { %v655_v53 = vstv %s1258_s9  ;;  %s287_s9 = scalar_lea.vmem [#allocation6], %s1201_s8 }
 0x31f   : > { %s1260_s14 = spop %1259  ;;  %v656_v56 = vmul.f32 %v655_v53, %v1794_v34 }
 0x320   : > { %v682_v55 = vstv %s1260_s14  ;;  %s1121_s14 = sshll.u32 %s287_s9, 4  ;;  %s1837_s14 = int_to_ptr.vmem [resolvable:$true] %s1121_s14 }
 0x321   : > { %v683_v57 = vmul.f32 %v1799_v35, %v682_v55  ;;  %s1262_s17 = spop %1261  ;;  %s1368_s20 = scalar_lea.vmem %s1837_s14, 512 }
 0x322   : > { %v685_v58 = vstv %s1262_s17  ;;  %s1238_s17 = sshll.u32 %s1510_s28, 9  ;;  %p1369_p5 = scmp.ne.s32.totalorder %s1837_s14, %s1368_s20 }
 0x323   : > { %v684_v59 = vadd.f32 %v683_v57, %v653_v54  ;;  %v686_v60 = vmul.f32 %v1799_v35, %v685_v58  ;;  %s1447_s28 = smov [#allocation6]  }
 0x324   : > { %p1370_p10 = pnand %p1369_p5, %p1904_p9  ;;  %s1372_s21 = sshll.u32 %s1447_s28, 4  ;;  %s1373_s21 = int_to_ptr.vmem [resolvable:$false] %s1372_s21 }
 0x325   : > { %v687_v61 = vadd.f32 %v686_v60, %v656_v56  ;;  %v688_v62 = vmul.f32 0.0009765625, %v684_v59  ;;  %s1374_s22 = scalar_lea.vmem %s1373_s21, 1024  ;;  %p1375_p2 = scmp.lt.s32.totalorder %s1837_s14, %s1373_s21 }
 0x326   : > { %p1371_p12 = pneg %p1370_p10  ;;  %p1376_p3 = scmp.lt.s32.totalorder %s1374_s22, %s1368_s20 }
 0x327   : > { %v689_v63 = vmul.f32 0.0009765625, %v687_v61  ;;  %697 = vperm.xlu1 %1333, %v688_v62   ;;  %v690_v0 = vmul.f32 %v688_v62, %v688_v62 }
 0x328   : > { %p1377_p4 = por %p1376_p3, %p1375_p2 }
 0x329   : > { %v691_v1 = vsub.f32 %v689_v63, %v690_v0 }
 0x32a   : > { %p1378_p7 = pnand %p1377_p4, %p1371_p12 }
 0x32b   : > { %v692_v4 = vmax.f32 %v691_v1, 0.0 }
 0x32d   : > { %v693_v5 = vadd.f32 1e-05, %v692_v4  ;;  %s1264_s18 = spop %1263 }
 0x32e   : > { %v1044_v6 = vstv %s1264_s18 }
 0x32f   : > { %1336 = vrsqrt.f32 %v693_v5  ;;  %s1266_s16 = spop %1265  ;;  %v1045_v12 = vmul.f32 %v1044_v6, %v1794_v34 }
 0x330   : > { %v1047_v7 = vstv %s1266_s16 }
 0x331   : > { %s1268_s19 = spop %1267  ;;  %v1048_v10 = vmul.f32 %v1047_v7, %v1794_v34 }
 0x332   : > { %v1073_v8 = vstv %s1268_s19  ;;  %s1842_s19 = scalar_lea.hbm %s1893_s7, %s1238_s17 }
 0x333   : > { %v1074_v13 = vmul.f32 %v1799_v35, %v1073_v8  ;;  %s1270_s15 = spop %1269 }
 0x334   : > { %v1076_v14 = vstv %s1270_s15  ;;  %s1844_s15 = scalar_lea.sflag [#allocation5], %s285_s29 }
 0x335   : > { %v1075_v15 = vadd.f32 %v1074_v13, %v1045_v12  ;;  %v1077_v11 = vmul.f32 %v1799_v35, %v1076_v14 }
 0x337   : > { %v1078_v16 = vadd.f32 %v1077_v11, %v1048_v10  ;;  %v1079_v17 = vmul.f32 0.0009765625, %v1075_v15 }
 0x339   : > { %v1337_v18 = vpop.eup %1336  ;;  %v1080_v20 = vmul.f32 0.0009765625, %v1078_v16  ;;  %1088 = vperm.xlu0 %1332, %v1079_v17   ;;  %v1081_v22 = vmul.f32 %v1079_v17, %v1079_v17 }
 0x33a   : > { %v702_v23 = vmul.f32 %v1337_v18, %v298_v9 }
 0x33b   : > { %v1082_v34 = vsub.f32 %v1080_v20, %v1081_v22 }
 0x33c   : > { %705 = vperm.xlu1 %1333, %v702_v23  }
 0x33d   : > { %v1083_v25 = vmax.f32 %v1082_v34, 0.0  ;;  %712 = vperm.xlu0 %1332, %v299_v24  }
 0x33f   : > { %v1084_v35 = vadd.f32 1e-05, %v1083_v25 }
 0x341   : > { %1338 = vrsqrt.f32 %v1084_v35 }
 0x34b   : > { %v1339_v26 = vpop.eup %1338 }
 0x34c   : > { %v1093_v28 = vmul.f32 %v1339_v26, %v298_v9 }
 0x34e   : > { %1096 = vperm.xlu1 %1333, %v1093_v28  }
 0x3a6   : > { %v698_v30 = vpop.permute.xlu1 %697 }
 0x3a7   : > { %v700_v32 = vsub.f32 %v1771_v19, %v698_v30  ;;  %v701_v33 = vsub.f32 %v1773_v21, %v698_v30 }
 0x3b8   : > { %v1089_v31 = vpop.permute.xlu0 %1088 }
 0x3b9   : > { %v1091_v42 = vsub.f32 %v1781_v27, %v1089_v31  ;;  %v1092_v43 = vsub.f32 %v1783_v29, %v1089_v31 }
 0x3bb   : > { %v706_v36 = vpop.permute.xlu1 %705 }
 0x3bc   : > { %v708_v37 = vmul.f32 %v706_v36, %v700_v32  ;;  %v709_v38 = vmul.f32 %v706_v36, %v701_v33  ;;  %v713_v39 = vpop.permute.xlu0 %712 }
 0x3be   : > { %v715_v40 = vadd.f32 %v713_v39, %v708_v37  ;;  %v716_v41 = vadd.f32 %v713_v39, %v709_v38 }
 0x3c0   : > { %717 = vst [vmem:[%s287_s9] sm:$0xff] %v715_v40  ;;  %718 = vst [vmem:[%s287_s9 + $0x8] sm:$0xff] %v716_v41 }
 0x3cd   : > { %v1097_v19 = vpop.permute.xlu1 %1096 }
 0x3ce   : > { %v1099_v44 = vmul.f32 %v1097_v19, %v1091_v42  ;;  %v1100_v21 = vmul.f32 %v1097_v19, %v1092_v43 }
 0x3d0   : > { %v1101_v45 = vadd.f32 %v1099_v44, %v713_v39  ;;  %v1102_v46 = vadd.f32 %v1100_v21, %v713_v39 }
 0x3d2   : > { %1228 = vst [vmem:[%s287_s9 + $0x10] sm:$0xff] %v1101_v45  ;;  %1229 = vst [vmem:[%s287_s9 + $0x18] sm:$0xff] %v1102_v46 }
 0x3d3   : > { %1381 = shalt.err (!%p1378_p7)
}
 0x3d4   : > { %s1382_s23 = scalar_lea.hbm %s1842_s19, 512  ;;  %s1386_s9 = scalar_lea.hbm %s1893_s7, 1024 }
 0x3d5   : > { %p1383_p8 = scmp.ne.s32.totalorder %s1842_s19, %s1382_s23  ;;  %p1387_p1 = scmp.lt.u32.totalorder %s1842_s19, %s1893_s7 }
 0x3d6   : > { %p1388_p0 = scmp.lt.u32.totalorder %s1386_s9, %s1382_s23  ;;  %p1390_p5 = scmp.lt.u32.totalorder %s1382_s23, %s1842_s19 }
 0x3d7   : > { %p1384_p11 = pnand %p1383_p8, %p1904_p9 }
 0x3d8   : > { %p1389_p6 = por %p1388_p0, %p1387_p1 }
 0x3d9   : > { %p1385_p13 = pneg %p1384_p11 }
 0x3da   : > { %p1391_p10 = por %p1390_p5, %p1389_p6 }
 0x3dc   : > { %p1392_p12 = pnand %p1391_p10, %p1385_p13 }
 0x3de   : > { %1395 = shalt.err (!%p1392_p12)
}
 0x3df   : > { %s1448_s16 = smov 256  }
 0x3e0   : > { %1275 = dma.vmem_to_hbm [thread:$0]  (%p1904_p9), %s1837_s14, 512, %s1842_s19, %s1844_s15, %s1448_s16, %s1448_s16, %s1438_s13  }
 0x3e1 PF: > { %p1287_p2 = scmp.ge.s32.totalorder %s1434_s27, 2  ;;  %s1136_s20 = sand.u32 1, %s1422_s24  }
 0x3e2   : > { %p1905_p3 = scmp.ne.s32.totalorder %s1898_s12, 0  ;;  %s1137_s28 = scalar_lea.sflag [#allocation5], %s1136_s20 }
 0x3e4   : > { %p1282_p4 = pnand %p1287_p2, %p1905_p3 }
 0x3e6   : > { %1417 = dma.done.wait (!%p1282_p4), %s1137_s28, 512  }
 0x3e7   : > { %1419 = vsyncadd (!%p1282_p4), %s1137_s28, 4294966784  ;;  %p18_p7 = scmp.ge.s32.totalorder %s1514_s30, 4   ;;  %s1906_s24 = smov %s1426_s25 }
 0x3e8   : > { %s1907_s25 = smov %s1430_s26  ;;  %s1908_s26 = smov %s1525_s10 }
 0x3e9   : > { %s1909_s27 = smov %s1514_s30  ;;  %20 = sbr.rel (!%p18_p7) target bundleno = 4 (0x4), region = 98 }
 0x3f0   :  { %1142 = vsyncpa [#allocation4], 1 }
 0x3f1   :  { %1144 = vsyncpa [#allocation4 + $0x1], 1 }
 0x3f2   :  { %1145 = vsyncpa [#allocation5], 1 }
 0x3f3   :  { %1147 = vsyncpa [#allocation5 + $0x1], 1 }

</bundles_post_ra>
